<compile_context>
chip_gen: v7x
topology: tpu7x:2x2x1
jax: 0.10.0
libtpu: 0.0.40
codegen_flags: <defaults>
</compile_context>

<pallas_src>
import functools

import jax
import jax.numpy as jnp
from jax import lax
from jax.experimental import pallas as pl
from jax.experimental.pallas import tpu as pltpu

_LN_EPS = 1e-5


def _round_up(x, m):
    return ((x + m - 1) // m) * m


def _vmem_limit_bytes():
    """Generation-aware scoped-VMEM budget.

    ~75% of capacity on 128 MiB parts (v5e/v6e), ~60% on 64 MiB parts (v7x) so the
    compiler keeps headroom for double-buffered I/O blocks and internal scratch.
    """
    try:
        cap = int(pltpu.get_tpu_info().vmem_capacity_bytes)
    except Exception:
        cap = 0
    if cap <= 0:
        return 48 * 1024 * 1024
    if cap <= 80 * 1024 * 1024:          # v7x-class (64 MiB per TensorCore)
        lim = int(cap * 0.60)
    else:                                # v5e / v6e (128 MiB)
        lim = int(cap * 0.75)
    return min(lim, 100 * 1024 * 1024)


def _layer_norm_rows(r, gamma, beta, eps):
    """Two-pass LayerNorm over the last dim of f32 `r` (biased variance, torch-style)."""
    mean = jnp.mean(r, axis=-1, keepdims=True)
    c = r - mean
    var = jnp.mean(c * c, axis=-1, keepdims=True)
    return c * lax.rsqrt(var + eps) * gamma + beta


# ----------------------------- MultiHeadAttention -----------------------------

def _mha_kernel(x_ref, wq_ref, bq_ref, wkv_ref, bkv_ref, wo_ref, bo_ref,
                g_ref, beta_ref, o_ref, attn_ref, kv_ref, *, num_heads, scale, eps):
    f32 = jnp.float32
    iq = pl.program_id(1)
    S = x_ref.shape[1]
    D = x_ref.shape[-1]
    tq = o_ref.shape[1]
    dh = D // num_heads

    # K/V for the whole sequence: computed once per batch element (iq == 0) with a
    # fused full-width (S, D) x (D, 2D) matmul and carried across query tiles in a
    # VMEM scratch (the iq grid axis is "arbitrary", so the carry is safe).
    @pl.when(iq == 0)
    def _():
        x_full = x_ref[0]                                            # (S, D)
        kv = jnp.dot(x_full, wkv_ref[...], preferred_element_type=f32)
        kv = kv + bkv_ref[...].astype(f32)
        kv_ref[0] = kv[:, :D].astype(kv_ref.dtype)                   # K  (S, D)
        kv_ref[1] = kv[:, D:].astype(kv_ref.dtype)                   # V  (S, D)

    q0 = iq * tq
    if tq % 8 == 0:
        q0 = pl.multiple_of(q0, 8)
    xq = x_ref[0, pl.ds(q0, tq), :]                                  # (tq, D)

    # Fused Q projection (full MXU width); softmax scale folded into q; single cast.
    q = jnp.dot(xq, wq_ref[...], preferred_element_type=f32)
    q = ((q + bq_ref[...].astype(f32)) * scale).astype(xq.dtype)     # (tq, D)

    k = kv_ref[0]                                                    # (S, D) caller dtype
    v = kv_ref[1]                                                    # (S, D)

    # Per-head attention (static unroll over a small H); heads are static lane
    # slices of the fused projections.  Output projection is accumulated per head
    # into a single (tq, D) f32 value against row-slices of Wo^T.
    out_acc = None
    for h in range(num_heads):
        sl = slice(h * dh, (h + 1) * dh)
        qh, kh, vh = q[:, sl], k[:, sl], v[:, sl]
        s = jnp.einsum("qd,kd->qk", qh, kh, preferred_element_type=f32)   # (tq, S)
        # TODO(synk): attn_mask (masked_fill with -inf) not implemented; None path only.
        m = jnp.max(s, axis=-1, keepdims=True)
        e = jnp.exp(s - m)
        p = e * pl.reciprocal(jnp.sum(e, axis=-1, keepdims=True), approx=True)
        attn_ref[0, h, :, :] = p.astype(attn_ref.dtype)
        # TODO(synk): attention dropout has p=0.0 in the module -> identity.
        ctx_h = jnp.dot(p.astype(xq.dtype), vh,
                        preferred_element_type=f32).astype(xq.dtype)      # (tq, dh)
        part = jnp.dot(ctx_h, wo_ref[h * dh:(h + 1) * dh, :],
                       preferred_element_type=f32)                        # (tq, D)
        out_acc = part if out_acc is None else out_acc + part

    out = out_acc + bo_ref[...].astype(f32)
    # TODO(synk): output dropout has p=0.0 in the module -> identity.
    r = xq.astype(f32) + out                                         # residual = query = x
    o_ref[0] = _layer_norm_rows(
        r, g_ref[...].astype(f32), beta_ref[...].astype(f32), eps).astype(o_ref.dtype)


def _pick_q_tile(S, q_tile):
    if q_tile is not None:
        if S % q_tile != 0:
            raise ValueError("q_tile must divide the sequence length")
        return q_tile
    if S <= 256:
        return S
    for cand in (256, 128, 64, 32, 16, 8):
        if S % cand == 0:
            return cand
    return S


def multi_head_attention(x, wq, bq, wk, bk, wv, bv, wo, bo, gamma, beta, *,
                         num_heads, q_tile=None, attn_dtype=None):
    """Fused MHA + residual + LayerNorm.  x: (B, S, D); w*: torch nn.Linear (out, in)."""
    B, S, D = x.shape
    H = num_heads
    assert D % H == 0
    dh = D // H
    attn_dtype = x.dtype if attn_dtype is None else attn_dtype

    # NOTE: the reference module computes the scale AFTER split_heads:
    # scale = (dim_per_head // num_heads) ** -0.5 (reading its `.max_size` as `.size`).
    scale = float(dh // H) ** -0.5

    tq = _pick_q_tile(S, q_tile)
    nq = S // tq

    # Fused projection weights (torch Linear stores (out, in); y = x @ W^T + b).
    wq_t = jnp.transpose(wq)                                            # (D, D)
    wkv_t = jnp.concatenate([jnp.transpose(wk), jnp.transpose(wv)], axis=1)  # (D, 2D)
    wo_t = jnp.transpose(wo)                                            # (D, D)
    bq_r = bq.reshape(1, D)
    bkv_r = jnp.concatenate([bk, bv]).reshape(1, 2 * D)
    bo_r = bo.reshape(1, D)
    g_r, beta_r = gamma.reshape(1, D), beta.reshape(1, D)

    kernel = functools.partial(_mha_kernel, num_heads=H, scale=scale, eps=_LN_EPS)
    const = lambda b, iq: (0, 0)

    itemsize = jnp.dtype(x.dtype).itemsize
    cost = pl.CostEstimate(
        flops=(2 * B * S * D * (3 * D)        # fused QKV projections
               + 4 * B * S * S * D            # scores + context
               + 2 * B * S * D * D            # output projection
               + 10 * B * S * D),             # residual + LayerNorm
        transcendentals=B * H * S * S + 2 * B * S,
        bytes_accessed=(itemsize * (2 * B * S * D + 4 * D * D + 7 * D)
                        + jnp.dtype(attn_dtype).itemsize * B * H * S * S),
    )

    out, attn = pl.pallas_call(
        kernel,
        out_shape=(jax.ShapeDtypeStruct((B, S, D), x.dtype),
                   jax.ShapeDtypeStruct((B, H, S, S), attn_dtype)),
        grid_spec=pltpu.PrefetchScalarGridSpec(
            num_scalar_prefetch=0,
            grid=(B, nq),                                   # batch parallel, q-tiles inner
            in_specs=[
                pl.BlockSpec((1, S, D), lambda b, iq: (b, 0, 0)),   # x (resident over iq)
                pl.BlockSpec((D, D), const),                        # Wq^T
                pl.BlockSpec((1, D), const),                        # bq
                pl.BlockSpec((D, 2 * D), const),                    # [Wk^T | Wv^T]
                pl.BlockSpec((1, 2 * D), const),                    # [bk | bv]
                pl.BlockSpec((D, D), const),                        # Wo^T
                pl.BlockSpec((1, D), const),                        # bo
                pl.BlockSpec((1, D), const),                        # ln gamma
                pl.BlockSpec((1, D), const),                        # ln beta
            ],
            out_specs=[
                pl.BlockSpec((1, tq, D), lambda b, iq: (b, iq, 0)),
                pl.BlockSpec((1, H, tq, S), lambda b, iq: (b, 0, iq, 0)),
            ],
            scratch_shapes=[pltpu.VMEM((2, S, D), x.dtype)],        # carried K/V
        ),
        compiler_params=pltpu.CompilerParams(
            dimension_semantics=("parallel", "arbitrary"),
            vmem_limit_bytes=_vmem_limit_bytes()),
        cost_estimate=cost,
    )(x, wq_t, bq_r, wkv_t, bkv_r, wo_t, bo_r, g_r, beta_r)
    return out, attn


# ------------------------- PositionalWiseFeedForward --------------------------

def _ffn_ln_kernel(x_ref, w1_ref, b1_ref, w2_ref, b2_ref, g_ref, beta_ref,
                   o_ref, acc_ref, *, eps):
    c = pl.program_id(1)

    @pl.when(c == 0)
    def _():
        acc_ref[...] = jnp.zeros_like(acc_ref)

    x = x_ref[...]                                          # (tm, D), caller dtype
    # y += relu(x @ W1[:, chunk] + b1[chunk]) @ W2[chunk, :]
    h = jnp.dot(x, w1_ref[...], preferred_element_type=jnp.float32)
    h = jnp.maximum(h + b1_ref[...].astype(jnp.float32), 0.0)
    acc_ref[...] += jnp.dot(h.astype(x.dtype), w2_ref[...],
                            preferred_element_type=jnp.float32)

    @pl.when(c == pl.num_programs(1) - 1)
    def _():
        # TODO(synk): dropout has p=0.0 in the module -> identity.
        y = acc_ref[...] + b2_ref[...].astype(jnp.float32)
        r = x.astype(jnp.float32) + y                       # residual + LN in f32
        o_ref[...] = _layer_norm_rows(
            r, g_ref[...].astype(jnp.float32), beta_ref[...].astype(jnp.float32), eps
        ).astype(o_ref.dtype)


def positional_wise_ffn(x, w1, b1, w2, b2, gamma, beta, *, tm=None, f_chunk=None):
    """Position-wise FFN + residual + LayerNorm.

    x: (B, S, D).  w1: (F, D) Conv1d(D->F, k=1) weight (kernel dim squeezed);
    w2: (D, F).  Weights stay fully VMEM-resident whenever they fit the
    generation-aware budget; otherwise F is streamed in the largest fitting chunk.
    """
    B, S, D = x.shape
    F = w1.shape[0]
    M = B * S
    itemsize = jnp.dtype(x.dtype).itemsize
    budget = int(_vmem_limit_bytes() * 0.8)

    # F chunking: prefer fully resident W1/W2 (constant block index -> DMA'd once
    # total, instead of once per row tile).
    if f_chunk is None:
        f_chunk = F
        if 4 * D * F * itemsize > budget // 2:
            for cand in (2048, 1024, 512, 256, 128):
                if cand < F and F % cand == 0 and 4 * D * cand * itemsize <= budget // 2:
                    f_chunk = cand
                    break
    assert F % f_chunk == 0
    fk = f_chunk
    n_fc = F // fk
    weight_bytes = 4 * D * fk * itemsize          # W1 + W2 chunk, double-buffered

    # Row tile: as large as the remaining budget allows (amortizes ~0.35us/step grid
    # overhead and weight refetch when n_fc > 1); same default on v5e/v6e/v7x.
    if tm is None:
        tm = 8
        for cand in (1024, 512, 256, 128, 64, 32, 16, 8):
            row_bytes = 4 * cand * D * itemsize + 4 * cand * D + 4 * cand * fk
            if weight_bytes + row_bytes <= budget:
                tm = cand
                break
    tm = max(8, min(tm, _round_up(M, 8)))
    assert tm % 8 == 0
    Mp = _round_up(M, tm)                 # pad rows instead of asserting divisibility

    x2d = x.reshape(M, D)
    if Mp != M:
        x2d = jnp.pad(x2d, ((0, Mp - M), (0, 0)))

    w1_t = jnp.transpose(w1)              # (D, F)
    w2_t = jnp.transpose(w2)              # (F, D)
    b1_r = b1.reshape(1, F)
    b2_r = b2.reshape(1, D)
    g_r, beta_r = gamma.reshape(1, D), beta.reshape(1, D)

    cost = pl.CostEstimate(
        flops=4 * Mp * D * F + 10 * Mp * D,
        transcendentals=Mp,               # one rsqrt per row
        bytes_accessed=itemsize * (2 * Mp * D + 2 * D * F + F + 3 * D),
    )

    out2d = pl.pallas_call(
        functools.partial(_ffn_ln_kernel, eps=_LN_EPS),
        out_shape=jax.ShapeDtypeStruct((Mp, D), x.dtype),
        grid_spec=pltpu.PrefetchScalarGridSpec(
            num_scalar_prefetch=0,
            grid=(Mp // tm, n_fc),        # rows parallel, F-chunks reduce (last)
            in_specs=[
                pl.BlockSpec((tm, D), lambda i, c: (i, 0)),   # x rows (resident over c)
                pl.BlockSpec((D, fk), lambda i, c: (0, c)),   # W1^T chunk (resident if fk==F)
                pl.BlockSpec((1, fk), lambda i, c: (0, c)),   # b1 chunk
                pl.BlockSpec((fk, D), lambda i, c: (c, 0)),   # W2^T chunk
                pl.BlockSpec((1, D), lambda i, c: (0, 0)),    # b2
                pl.BlockSpec((1, D), lambda i, c: (0, 0)),    # ln gamma
                pl.BlockSpec((1, D), lambda i, c: (0, 0)),    # ln beta
            ],
            out_specs=pl.BlockSpec((tm, D), lambda i, c: (i, 0)),
            scratch_shapes=[pltpu.VMEM((tm, D), jnp.float32)],
        ),
        compiler_params=pltpu.CompilerParams(
            dimension_semantics=("parallel", "arbitrary"),
            vmem_limit_bytes=_vmem_limit_bytes()),
        cost_estimate=cost,
    )(x2d, w1_t, b1_r, w2_t, b2_r, g_r, beta_r)

    return out2d[:M].reshape(B, S, D)


# -------------------------------- EncoderLayer --------------------------------

def encoder_layer(x, wq, bq, wk, bk, wv, bv, wo, bo, ln1_g, ln1_b,
                  w1, b1, w2, b2, ln2_g, ln2_b, *, num_heads, attn_mask=None,
                  q_tile=None, ffn_tm=None, ffn_f_chunk=None):
    if attn_mask is not None:
        # TODO(synk): attn_mask path (masked_fill with -inf) not implemented.
        raise NotImplementedError("attn_mask is not supported")
    ctx, attn = multi_head_attention(x, wq, bq, wk, bk, wv, bv, wo, bo,
                                     ln1_g, ln1_b, num_heads=num_heads, q_tile=q_tile)
    out = positional_wise_ffn(ctx, w1, b1, w2, b2, ln2_g, ln2_b,
                              tm=ffn_tm, f_chunk=ffn_f_chunk)
    return out, attn


# ----------------------------------- tests -------------------------------------

def _run_case(key, B, S, D, H, F, dt, q_tile=None, ffn_tm=None, ffn_f_chunk=None):
    ks = jax.random.split(key, 16)

    def rnd(k, shape, s=0.05):
        return (jax.random.normal(k, shape, dtype=jnp.float32) * s).astype(dt)

    x = jax.random.normal(ks[0], (B, S, D), dtype=jnp.float32).astype(dt)
    wq, bq = rnd(ks[1], (D, D)), rnd(ks[2], (D,))
    wk, bk = rnd(ks[3], (D, D)), rnd(ks[4], (D,))
    wv, bv = rnd(ks[5], (D, D)), rnd(ks[6], (D,))
    wo, bo = rnd(ks[7], (D, D)), rnd(ks[8], (D,))
    ln1_g, ln1_b = jnp.ones((D,), dt), jnp.zeros((D,), dt)
    w1, b1 = rnd(ks[9], (F, D)), rnd(ks[10], (F,))
    w2, b2 = rnd(ks[11], (D, F)), rnd(ks[12], (D,))
    ln2_g, ln2_b = jnp.ones((D,), dt), jnp.zeros((D,), dt)

    out, attn = encoder_layer(x, wq, bq, wk, bk, wv, bv, wo, bo, ln1_g, ln1_b,
                              w1, b1, w2, b2, ln2_g, ln2_b, num_heads=H,
                              q_tile=q_tile, ffn_tm=ffn_tm, ffn_f_chunk=ffn_f_chunk)
    jax.block_until_ready(out)
    jax.block_until_ready(attn)

    # ---- staged reference checks (mirrored bf16-operand math in plain JAX) ----
    f32 = jnp.float32
    dh = D // H
    scale = float(dh // H) ** -0.5        # module's post-split-heads scale

    def layer_norm_ref(r, g, b):
        mu = jnp.mean(r, axis=-1, keepdims=True)
        var = jnp.mean((r - mu) ** 2, axis=-1, keepdims=True)
        return (r - mu) * lax.rsqrt(var + _LN_EPS) * g.astype(f32) + b.astype(f32)

    def linear_ref(v, w, b):
        return (jnp.einsum("bsd,od->bso", v, w, preferred_element_type=f32)
                + b.astype(f32))

    q = linear_ref(x, wq, bq)
    k = linear_ref(x, wk, bk)
    vv = linear_ref(x, wv, bv)

    def split(t):
        return t.reshape(B, S, H, dh).transpose(0, 2, 1, 3)

    qh, kh, vh = split(q), split(k), split(vv)
    s = jnp.einsum("bhqe,bhke->bhqk", qh.astype(dt), kh.astype(dt),
                   preferred_element_type=f32) * scale
    p_ref = jax.nn.softmax(s, axis=-1)
    ctx_ref = jnp.einsum("bhqk,bhke->bhqe", p_ref.astype(dt), vh.astype(dt),
                         preferred_element_type=f32)
    ctx_ref = ctx_ref.transpose(0, 2, 1, 3).reshape(B, S, D)
    mha_ref = layer_norm_ref(
        x.astype(f32) + linear_ref(ctx_ref.astype(dt), wo, bo), ln1_g, ln1_b)

    ctx_k, attn_k = multi_head_attention(x, wq, bq, wk, bk, wv, bv, wo, bo,
                                         ln1_g, ln1_b, num_heads=H, q_tile=q_tile)
    assert jnp.allclose(attn_k.astype(f32), p_ref, atol=2e-2, rtol=2e-2), "attention mismatch"
    assert jnp.allclose(ctx_k.astype(f32), mha_ref, atol=5e-2, rtol=5e-2), "MHA mismatch"

    # FFN reference driven by the kernel's own attention output (tight check).
    a = ctx_k
    hh = jnp.maximum(jnp.einsum("bsd,fd->bsf", a, w1, preferred_element_type=f32)
                     + b1.astype(f32), 0.0)
    y = (jnp.einsum("bsf,df->bsd", hh.astype(dt), w2, preferred_element_type=f32)
         + b2.astype(f32))
    ffn_ref = layer_norm_ref(a.astype(f32) + y, ln2_g, ln2_b)
    assert jnp.allclose(out.astype(f32), ffn_ref, atol=5e-2, rtol=5e-2), "FFN mismatch"


if __name__ == "__main__":
    key = jax.random.PRNGKey(0)
    k1, k2 = jax.random.split(key)

    # Small demo shapes consistent with the module (model_dim / ffn_dim 128-aligned);
    # bf16 operands, f32 MXU accumulation.  Single query tile, resident FFN weights.
    _run_case(k1, B=2, S=8, D=128, H=4, F=256, dt=jnp.bfloat16)

    # Slightly longer sequence to exercise the tiled-query path (nq=2), FFN F-chunk
    # streaming (n_fc=2) and multiple row tiles.
    _run_case(k2, B=2, S=256, D=128, H=4, F=512, dt=jnp.bfloat16,
              q_tile=128, ffn_tm=128, ffn_f_chunk=256)

    print("KERNEL_OK")
</pallas_src>

<mosaic_0001>
module attributes {stable_mosaic.version = 11 : i64} {
  func.func @_mha_kernel(%arg0: i32, %arg1: i32, %arg2: memref<1x8x128xbf16, #tpu.memory_space<vmem>>, %arg3: memref<128x128xbf16, #tpu.memory_space<vmem>>, %arg4: memref<1x128xbf16, #tpu.memory_space<vmem>>, %arg5: memref<128x256xbf16, #tpu.memory_space<vmem>>, %arg6: memref<1x256xbf16, #tpu.memory_space<vmem>>, %arg7: memref<128x128xbf16, #tpu.memory_space<vmem>>, %arg8: memref<1x128xbf16, #tpu.memory_space<vmem>>, %arg9: memref<1x128xbf16, #tpu.memory_space<vmem>>, %arg10: memref<1x128xbf16, #tpu.memory_space<vmem>>, %arg11: memref<1x8x128xbf16, #tpu.memory_space<vmem>>, %arg12: memref<1x4x8x8xbf16, #tpu.memory_space<vmem>>, %arg13: memref<2x8x128xbf16, #tpu.memory_space<vmem>>) attributes {dimension_semantics = [#tpu.dimension_semantics<parallel>, #tpu.dimension_semantics<arbitrary>], iteration_bounds = array<i64: 2, 1>, scalar_prefetch = 0 : i64, scratch_operands = 1 : i64, tpu.core_type = #tpu.core_type<tc>, window_params = [{transform_indices = @transform_0, window_bounds = array<i64: 1, 8, 128>}, {pipeline_mode = #tpu.pipeline_mode<synchronous>, transform_indices = @transform_1, window_bounds = array<i64: 128, 128>}, {pipeline_mode = #tpu.pipeline_mode<synchronous>, transform_indices = @transform_2, window_bounds = array<i64: 1, 128>}, {pipeline_mode = #tpu.pipeline_mode<synchronous>, transform_indices = @transform_3, window_bounds = array<i64: 128, 256>}, {pipeline_mode = #tpu.pipeline_mode<synchronous>, transform_indices = @transform_4, window_bounds = array<i64: 1, 256>}, {pipeline_mode = #tpu.pipeline_mode<synchronous>, transform_indices = @transform_5, window_bounds = array<i64: 128, 128>}, {pipeline_mode = #tpu.pipeline_mode<synchronous>, transform_indices = @transform_6, window_bounds = array<i64: 1, 128>}, {pipeline_mode = #tpu.pipeline_mode<synchronous>, transform_indices = @transform_7, window_bounds = array<i64: 1, 128>}, {pipeline_mode = #tpu.pipeline_mode<synchronous>, transform_indices = @transform_8, window_bounds = array<i64: 1, 128>}, {transform_indices = @transform_9, window_bounds = array<i64: 1, 8, 128>}, {transform_indices = @transform_10, window_bounds = array<i64: 1, 4, 8, 8>}]} {
    %c0_i32 = arith.constant 0 : i32
    %0 = arith.cmpi eq, %arg1, %c0_i32 : i32
    %1 = arith.extui %0 : i1 to i32
    %c0_i32_0 = arith.constant 0 : i32
    %2 = arith.cmpi ne, %1, %c0_i32_0 : i32
    scf.if %2 {
      %c0_65 = arith.constant 0 : index
      %c0_66 = arith.constant 0 : index
      %c0_67 = arith.constant 0 : index
      %150 = vector.load %arg2[%c0_65, %c0_66, %c0_67] : memref<1x8x128xbf16, #tpu.memory_space<vmem>>, vector<1x8x128xbf16>
      %151 = vector.shape_cast %150 : vector<1x8x128xbf16> to vector<8x128xbf16>
      %c0_68 = arith.constant 0 : index
      %c0_69 = arith.constant 0 : index
      %152 = vector.load %arg5[%c0_68, %c0_69] : memref<128x256xbf16, #tpu.memory_space<vmem>>, vector<128x256xbf16>
      %cst_70 = arith.constant dense<0.000000e+00> : vector<8x256xf32>
      %153 = tpu.matmul %151, %152, %cst_70 {dimension_numbers = #tpu.dot_dimension_numbers<[1], [0], [0], [1], [0, 0, 1, 1], [], []>} : vector<8x128xbf16>, vector<128x256xbf16>, vector<8x256xf32> -> vector<8x256xf32>
      %c0_71 = arith.constant 0 : index
      %c0_72 = arith.constant 0 : index
      %154 = vector.load %arg6[%c0_71, %c0_72] : memref<1x256xbf16, #tpu.memory_space<vmem>>, vector<1x256xbf16>
      %155 = arith.extf %154 : vector<1x256xbf16> to vector<1x256xf32>
      %156 = vector.broadcast %155 : vector<1x256xf32> to vector<8x256xf32>
      %157 = arith.addf %153, %156 : vector<8x256xf32>
      %158 = vector.extract_strided_slice %157 {offsets = [0, 0], sizes = [8, 128], strides = [1, 1]} : vector<8x256xf32> to vector<8x128xf32>
      %159 = arith.truncf %158 : vector<8x128xf32> to vector<8x128xbf16>
      %c0_73 = arith.constant 0 : index
      %c0_74 = arith.constant 0 : index
      %c0_75 = arith.constant 0 : index
      %160 = vector.load %arg13[%c0_73, %c0_74, %c0_75] : memref<2x8x128xbf16, #tpu.memory_space<vmem>>, vector<1x8x128xbf16>
      %161 = vector.shape_cast %160 : vector<1x8x128xbf16> to vector<8x128xbf16>
      %162 = vector.shape_cast %159 : vector<8x128xbf16> to vector<1x8x128xbf16>
      tpu.vector_store %arg13[%c0_73, %c0_74, %c0_75], %162 {strides = array<i32>} : memref<2x8x128xbf16, #tpu.memory_space<vmem>>, vector<1x8x128xbf16>,
      %163 = vector.extract_strided_slice %157 {offsets = [0, 128], sizes = [8, 128], strides = [1, 1]} : vector<8x256xf32> to vector<8x128xf32>
      %164 = arith.truncf %163 : vector<8x128xf32> to vector<8x128xbf16>
      %c1_76 = arith.constant 1 : index
      %c0_77 = arith.constant 0 : index
      %c0_78 = arith.constant 0 : index
      %165 = vector.load %arg13[%c1_76, %c0_77, %c0_78] : memref<2x8x128xbf16, #tpu.memory_space<vmem>>, vector<1x8x128xbf16>
      %166 = vector.shape_cast %165 : vector<1x8x128xbf16> to vector<8x128xbf16>
      %167 = vector.shape_cast %164 : vector<8x128xbf16> to vector<1x8x128xbf16>
      tpu.vector_store %arg13[%c1_76, %c0_77, %c0_78], %167 {strides = array<i32>} : memref<2x8x128xbf16, #tpu.memory_space<vmem>>, vector<1x8x128xbf16>,
    } else {
    }
    %c8_i32 = arith.constant 8 : i32
    %3 = arith.muli %arg1, %c8_i32 : i32
    %4 = tpu.assume_multiple %3, 8 : i32
    %c0 = arith.constant 0 : index
    %5 = arith.index_cast %4 : i32 to index
    %c0_1 = arith.constant 0 : index
    %6 = vector.load %arg2[%c0, %5, %c0_1] : memref<1x8x128xbf16, #tpu.memory_space<vmem>>, vector<1x8x128xbf16>
    %7 = vector.shape_cast %6 : vector<1x8x128xbf16> to vector<8x128xbf16>
    %c0_2 = arith.constant 0 : index
    %c0_3 = arith.constant 0 : index
    %8 = vector.load %arg3[%c0_2, %c0_3] : memref<128x128xbf16, #tpu.memory_space<vmem>>, vector<128x128xbf16>
    %cst = arith.constant dense<0.000000e+00> : vector<8x128xf32>
    %9 = tpu.matmul %7, %8, %cst {dimension_numbers = #tpu.dot_dimension_numbers<[1], [0], [0], [1], [0, 0, 1, 1], [], []>} : vector<8x128xbf16>, vector<128x128xbf16>, vector<8x128xf32> -> vector<8x128xf32>
    %c0_4 = arith.constant 0 : index
    %c0_5 = arith.constant 0 : index
    %10 = vector.load %arg4[%c0_4, %c0_5] : memref<1x128xbf16, #tpu.memory_space<vmem>>, vector<1x128xbf16>
    %11 = arith.extf %10 : vector<1x128xbf16> to vector<1x128xf32>
    %12 = vector.broadcast %11 : vector<1x128xf32> to vector<8x128xf32>
    %13 = arith.addf %9, %12 : vector<8x128xf32>
    %cst_6 = arith.constant 0.353553385 : f32
    %14 = vector.broadcast %cst_6 : f32 to vector<8x128xf32>
    %15 = arith.mulf %13, %14 : vector<8x128xf32>
    %16 = arith.truncf %15 : vector<8x128xf32> to vector<8x128xbf16>
    %c0_7 = arith.constant 0 : index
    %c0_8 = arith.constant 0 : index
    %c0_9 = arith.constant 0 : index
    %17 = vector.load %arg13[%c0_7, %c0_8, %c0_9] : memref<2x8x128xbf16, #tpu.memory_space<vmem>>, vector<1x8x128xbf16>
    %18 = vector.shape_cast %17 : vector<1x8x128xbf16> to vector<8x128xbf16>
    %c1 = arith.constant 1 : index
    %c0_10 = arith.constant 0 : index
    %c0_11 = arith.constant 0 : index
    %19 = vector.load %arg13[%c1, %c0_10, %c0_11] : memref<2x8x128xbf16, #tpu.memory_space<vmem>>, vector<1x8x128xbf16>
    %20 = vector.shape_cast %19 : vector<1x8x128xbf16> to vector<8x128xbf16>
    %21 = vector.extract_strided_slice %16 {offsets = [0, 0], sizes = [8, 32], strides = [1, 1]} : vector<8x128xbf16> to vector<8x32xbf16>
    %22 = vector.extract_strided_slice %18 {offsets = [0, 0], sizes = [8, 32], strides = [1, 1]} : vector<8x128xbf16> to vector<8x32xbf16>
    %23 = vector.extract_strided_slice %20 {offsets = [0, 0], sizes = [8, 32], strides = [1, 1]} : vector<8x128xbf16> to vector<8x32xbf16>
    "tpu.trace_start"() <{level = 10 : i32, message = "qd,kd->qk"}> : () -> ()
    %cst_12 = arith.constant dense<0.000000e+00> : vector<8x8xf32>
    %24 = tpu.matmul %21, %22, %cst_12 {dimension_numbers = #tpu.dot_dimension_numbers<[1], [1], [0], [0], [0, 0, 1, 0], [], []>} : vector<8x32xbf16>, vector<8x32xbf16>, vector<8x8xf32> -> vector<8x8xf32>
    "tpu.trace_stop"() : () -> ()
    %cst_13 = arith.constant dense<0xFF800000> : vector<8xf32>
    %25 = vector.multi_reduction <maximumf>, %24, %cst_13 [1] : vector<8x8xf32> to vector<8xf32>
    %26 = vector.shape_cast %25 : vector<8xf32> to vector<8x1xf32>
    %27 = vector.broadcast %26 : vector<8x1xf32> to vector<8x8xf32>
    %28 = arith.subf %24, %27 : vector<8x8xf32>
    %29 = math.exp %28 : vector<8x8xf32>
    %cst_14 = arith.constant dense<0.000000e+00> : vector<8xf32>
    %30 = vector.multi_reduction <add>, %29, %cst_14 [1] : vector<8x8xf32> to vector<8xf32>
    %31 = vector.shape_cast %30 : vector<8xf32> to vector<8x1xf32>
    %32 = tpu.reciprocal %31 {approx = true} : vector<8x1xf32> -> vector<8x1xf32>
    %33 = vector.broadcast %32 : vector<8x1xf32> to vector<8x8xf32>
    %34 = arith.mulf %29, %33 : vector<8x8xf32>
    %35 = arith.truncf %34 : vector<8x8xf32> to vector<8x8xbf16>
    %c0_15 = arith.constant 0 : index
    %c0_16 = arith.constant 0 : index
    %c0_17 = arith.constant 0 : index
    %c0_18 = arith.constant 0 : index
    %36 = vector.load %arg12[%c0_15, %c0_16, %c0_17, %c0_18] : memref<1x4x8x8xbf16, #tpu.memory_space<vmem>>, vector<1x1x8x8xbf16>
    %37 = vector.shape_cast %36 : vector<1x1x8x8xbf16> to vector<8x8xbf16>
    %38 = vector.shape_cast %35 : vector<8x8xbf16> to vector<1x1x8x8xbf16>
    tpu.vector_store %arg12[%c0_15, %c0_16, %c0_17, %c0_18], %38 {strides = array<i32>} : memref<1x4x8x8xbf16, #tpu.memory_space<vmem>>, vector<1x1x8x8xbf16>,
    %39 = arith.truncf %34 : vector<8x8xf32> to vector<8x8xbf16>
    %cst_19 = arith.constant dense<0.000000e+00> : vector<8x32xf32>
    %40 = tpu.matmul %39, %23, %cst_19 {dimension_numbers = #tpu.dot_dimension_numbers<[1], [0], [0], [1], [0, 0, 1, 1], [], []>} : vector<8x8xbf16>, vector<8x32xbf16>, vector<8x32xf32> -> vector<8x32xf32>
    %41 = arith.truncf %40 : vector<8x32xf32> to vector<8x32xbf16>
    %c0_20 = arith.constant 0 : index
    %c0_21 = arith.constant 0 : index
    %42 = vector.load %arg7[%c0_20, %c0_21] : memref<128x128xbf16, #tpu.memory_space<vmem>>, vector<32x128xbf16>
    %cst_22 = arith.constant dense<0.000000e+00> : vector<8x128xf32>
    %43 = tpu.matmul %41, %42, %cst_22 {dimension_numbers = #tpu.dot_dimension_numbers<[1], [0], [0], [1], [0, 0, 1, 1], [], []>} : vector<8x32xbf16>, vector<32x128xbf16>, vector<8x128xf32> -> vector<8x128xf32>
    %44 = vector.extract_strided_slice %16 {offsets = [0, 32], sizes = [8, 32], strides = [1, 1]} : vector<8x128xbf16> to vector<8x32xbf16>
    %45 = vector.extract_strided_slice %18 {offsets = [0, 32], sizes = [8, 32], strides = [1, 1]} : vector<8x128xbf16> to vector<8x32xbf16>
    %46 = vector.extract_strided_slice %20 {offsets = [0, 32], sizes = [8, 32], strides = [1, 1]} : vector<8x128xbf16> to vector<8x32xbf16>
    "tpu.trace_start"() <{level = 10 : i32, message = "qd,kd->qk"}> : () -> ()
    %cst_23 = arith.constant dense<0.000000e+00> : vector<8x8xf32>
    %47 = tpu.matmul %44, %45, %cst_23 {dimension_numbers = #tpu.dot_dimension_numbers<[1], [1], [0], [0], [0, 0, 1, 0], [], []>} : vector<8x32xbf16>, vector<8x32xbf16>, vector<8x8xf32> -> vector<8x8xf32>
    "tpu.trace_stop"() : () -> ()
    %cst_24 = arith.constant dense<0xFF800000> : vector<8xf32>
    %48 = vector.multi_reduction <maximumf>, %47, %cst_24 [1] : vector<8x8xf32> to vector<8xf32>
    %49 = vector.shape_cast %48 : vector<8xf32> to vector<8x1xf32>
    %50 = vector.broadcast %49 : vector<8x1xf32> to vector<8x8xf32>
    %51 = arith.subf %47, %50 : vector<8x8xf32>
    %52 = math.exp %51 : vector<8x8xf32>
    %cst_25 = arith.constant dense<0.000000e+00> : vector<8xf32>
    %53 = vector.multi_reduction <add>, %52, %cst_25 [1] : vector<8x8xf32> to vector<8xf32>
    %54 = vector.shape_cast %53 : vector<8xf32> to vector<8x1xf32>
    %55 = tpu.reciprocal %54 {approx = true} : vector<8x1xf32> -> vector<8x1xf32>
    %56 = vector.broadcast %55 : vector<8x1xf32> to vector<8x8xf32>
    %57 = arith.mulf %52, %56 : vector<8x8xf32>
    %58 = arith.truncf %57 : vector<8x8xf32> to vector<8x8xbf16>
    %c0_26 = arith.constant 0 : index
    %c1_27 = arith.constant 1 : index
    %c0_28 = arith.constant 0 : index
    %c0_29 = arith.constant 0 : index
    %59 = vector.load %arg12[%c0_26, %c1_27, %c0_28, %c0_29] : memref<1x4x8x8xbf16, #tpu.memory_space<vmem>>, vector<1x1x8x8xbf16>
    %60 = vector.shape_cast %59 : vector<1x1x8x8xbf16> to vector<8x8xbf16>
    %61 = vector.shape_cast %58 : vector<8x8xbf16> to vector<1x1x8x8xbf16>
    tpu.vector_store %arg12[%c0_26, %c1_27, %c0_28, %c0_29], %61 {strides = array<i32>} : memref<1x4x8x8xbf16, #tpu.memory_space<vmem>>, vector<1x1x8x8xbf16>,
    %62 = arith.truncf %57 : vector<8x8xf32> to vector<8x8xbf16>
    %cst_30 = arith.constant dense<0.000000e+00> : vector<8x32xf32>
    %63 = tpu.matmul %62, %46, %cst_30 {dimension_numbers = #tpu.dot_dimension_numbers<[1], [0], [0], [1], [0, 0, 1, 1], [], []>} : vector<8x8xbf16>, vector<8x32xbf16>, vector<8x32xf32> -> vector<8x32xf32>
    %64 = arith.truncf %63 : vector<8x32xf32> to vector<8x32xbf16>
    %c32 = arith.constant 32 : index
    %c0_31 = arith.constant 0 : index
    %65 = vector.load %arg7[%c32, %c0_31] : memref<128x128xbf16, #tpu.memory_space<vmem>>, vector<32x128xbf16>
    %cst_32 = arith.constant dense<0.000000e+00> : vector<8x128xf32>
    %66 = tpu.matmul %64, %65, %cst_32 {dimension_numbers = #tpu.dot_dimension_numbers<[1], [0], [0], [1], [0, 0, 1, 1], [], []>} : vector<8x32xbf16>, vector<32x128xbf16>, vector<8x128xf32> -> vector<8x128xf32>
    %67 = arith.addf %43, %66 : vector<8x128xf32>
    %68 = vector.extract_strided_slice %16 {offsets = [0, 64], sizes = [8, 32], strides = [1, 1]} : vector<8x128xbf16> to vector<8x32xbf16>
    %69 = vector.extract_strided_slice %18 {offsets = [0, 64], sizes = [8, 32], strides = [1, 1]} : vector<8x128xbf16> to vector<8x32xbf16>
    %70 = vector.extract_strided_slice %20 {offsets = [0, 64], sizes = [8, 32], strides = [1, 1]} : vector<8x128xbf16> to vector<8x32xbf16>
    "tpu.trace_start"() <{level = 10 : i32, message = "qd,kd->qk"}> : () -> ()
    %cst_33 = arith.constant dense<0.000000e+00> : vector<8x8xf32>
    %71 = tpu.matmul %68, %69, %cst_33 {dimension_numbers = #tpu.dot_dimension_numbers<[1], [1], [0], [0], [0, 0, 1, 0], [], []>} : vector<8x32xbf16>, vector<8x32xbf16>, vector<8x8xf32> -> vector<8x8xf32>
    "tpu.trace_stop"() : () -> ()
    %cst_34 = arith.constant dense<0xFF800000> : vector<8xf32>
    %72 = vector.multi_reduction <maximumf>, %71, %cst_34 [1] : vector<8x8xf32> to vector<8xf32>
    %73 = vector.shape_cast %72 : vector<8xf32> to vector<8x1xf32>
    %74 = vector.broadcast %73 : vector<8x1xf32> to vector<8x8xf32>
    %75 = arith.subf %71, %74 : vector<8x8xf32>
    %76 = math.exp %75 : vector<8x8xf32>
    %cst_35 = arith.constant dense<0.000000e+00> : vector<8xf32>
    %77 = vector.multi_reduction <add>, %76, %cst_35 [1] : vector<8x8xf32> to vector<8xf32>
    %78 = vector.shape_cast %77 : vector<8xf32> to vector<8x1xf32>
    %79 = tpu.reciprocal %78 {approx = true} : vector<8x1xf32> -> vector<8x1xf32>
    %80 = vector.broadcast %79 : vector<8x1xf32> to vector<8x8xf32>
    %81 = arith.mulf %76, %80 : vector<8x8xf32>
    %82 = arith.truncf %81 : vector<8x8xf32> to vector<8x8xbf16>
    %c0_36 = arith.constant 0 : index
    %c2 = arith.constant 2 : index
    %c0_37 = arith.constant 0 : index
    %c0_38 = arith.constant 0 : index
    %83 = vector.load %arg12[%c0_36, %c2, %c0_37, %c0_38] : memref<1x4x8x8xbf16, #tpu.memory_space<vmem>>, vector<1x1x8x8xbf16>
    %84 = vector.shape_cast %83 : vector<1x1x8x8xbf16> to vector<8x8xbf16>
    %85 = vector.shape_cast %82 : vector<8x8xbf16> to vector<1x1x8x8xbf16>
    tpu.vector_store %arg12[%c0_36, %c2, %c0_37, %c0_38], %85 {strides = array<i32>} : memref<1x4x8x8xbf16, #tpu.memory_space<vmem>>, vector<1x1x8x8xbf16>,
    %86 = arith.truncf %81 : vector<8x8xf32> to vector<8x8xbf16>
    %cst_39 = arith.constant dense<0.000000e+00> : vector<8x32xf32>
    %87 = tpu.matmul %86, %70, %cst_39 {dimension_numbers = #tpu.dot_dimension_numbers<[1], [0], [0], [1], [0, 0, 1, 1], [], []>} : vector<8x8xbf16>, vector<8x32xbf16>, vector<8x32xf32> -> vector<8x32xf32>
    %88 = arith.truncf %87 : vector<8x32xf32> to vector<8x32xbf16>
    %c64 = arith.constant 64 : index
    %c0_40 = arith.constant 0 : index
    %89 = vector.load %arg7[%c64, %c0_40] : memref<128x128xbf16, #tpu.memory_space<vmem>>, vector<32x128xbf16>
    %cst_41 = arith.constant dense<0.000000e+00> : vector<8x128xf32>
    %90 = tpu.matmul %88, %89, %cst_41 {dimension_numbers = #tpu.dot_dimension_numbers<[1], [0], [0], [1], [0, 0, 1, 1], [], []>} : vector<8x32xbf16>, vector<32x128xbf16>, vector<8x128xf32> -> vector<8x128xf32>
    %91 = arith.addf %67, %90 : vector<8x128xf32>
    %92 = vector.extract_strided_slice %16 {offsets = [0, 96], sizes = [8, 32], strides = [1, 1]} : vector<8x128xbf16> to vector<8x32xbf16>
    %93 = vector.extract_strided_slice %18 {offsets = [0, 96], sizes = [8, 32], strides = [1, 1]} : vector<8x128xbf16> to vector<8x32xbf16>
    %94 = vector.extract_strided_slice %20 {offsets = [0, 96], sizes = [8, 32], strides = [1, 1]} : vector<8x128xbf16> to vector<8x32xbf16>
    "tpu.trace_start"() <{level = 10 : i32, message = "qd,kd->qk"}> : () -> ()
    %cst_42 = arith.constant dense<0.000000e+00> : vector<8x8xf32>
    %95 = tpu.matmul %92, %93, %cst_42 {dimension_numbers = #tpu.dot_dimension_numbers<[1], [1], [0], [0], [0, 0, 1, 0], [], []>} : vector<8x32xbf16>, vector<8x32xbf16>, vector<8x8xf32> -> vector<8x8xf32>
    "tpu.trace_stop"() : () -> ()
    %cst_43 = arith.constant dense<0xFF800000> : vector<8xf32>
    %96 = vector.multi_reduction <maximumf>, %95, %cst_43 [1] : vector<8x8xf32> to vector<8xf32>
    %97 = vector.shape_cast %96 : vector<8xf32> to vector<8x1xf32>
    %98 = vector.broadcast %97 : vector<8x1xf32> to vector<8x8xf32>
    %99 = arith.subf %95, %98 : vector<8x8xf32>
    %100 = math.exp %99 : vector<8x8xf32>
    %cst_44 = arith.constant dense<0.000000e+00> : vector<8xf32>
    %101 = vector.multi_reduction <add>, %100, %cst_44 [1] : vector<8x8xf32> to vector<8xf32>
    %102 = vector.shape_cast %101 : vector<8xf32> to vector<8x1xf32>
    %103 = tpu.reciprocal %102 {approx = true} : vector<8x1xf32> -> vector<8x1xf32>
    %104 = vector.broadcast %103 : vector<8x1xf32> to vector<8x8xf32>
    %105 = arith.mulf %100, %104 : vector<8x8xf32>
    %106 = arith.truncf %105 : vector<8x8xf32> to vector<8x8xbf16>
    %c0_45 = arith.constant 0 : index
    %c3 = arith.constant 3 : index
    %c0_46 = arith.constant 0 : index
    %c0_47 = arith.constant 0 : index
    %107 = vector.load %arg12[%c0_45, %c3, %c0_46, %c0_47] : memref<1x4x8x8xbf16, #tpu.memory_space<vmem>>, vector<1x1x8x8xbf16>
    %108 = vector.shape_cast %107 : vector<1x1x8x8xbf16> to vector<8x8xbf16>
    %109 = vector.shape_cast %106 : vector<8x8xbf16> to vector<1x1x8x8xbf16>
    tpu.vector_store %arg12[%c0_45, %c3, %c0_46, %c0_47], %109 {strides = array<i32>} : memref<1x4x8x8xbf16, #tpu.memory_space<vmem>>, vector<1x1x8x8xbf16>,
    %110 = arith.truncf %105 : vector<8x8xf32> to vector<8x8xbf16>
    %cst_48 = arith.constant dense<0.000000e+00> : vector<8x32xf32>
    %111 = tpu.matmul %110, %94, %cst_48 {dimension_numbers = #tpu.dot_dimension_numbers<[1], [0], [0], [1], [0, 0, 1, 1], [], []>} : vector<8x8xbf16>, vector<8x32xbf16>, vector<8x32xf32> -> vector<8x32xf32>
    %112 = arith.truncf %111 : vector<8x32xf32> to vector<8x32xbf16>
    %c96 = arith.constant 96 : index
    %c0_49 = arith.constant 0 : index
    %113 = vector.load %arg7[%c96, %c0_49] : memref<128x128xbf16, #tpu.memory_space<vmem>>, vector<32x128xbf16>
    %cst_50 = arith.constant dense<0.000000e+00> : vector<8x128xf32>
    %114 = tpu.matmul %112, %113, %cst_50 {dimension_numbers = #tpu.dot_dimension_numbers<[1], [0], [0], [1], [0, 0, 1, 1], [], []>} : vector<8x32xbf16>, vector<32x128xbf16>, vector<8x128xf32> -> vector<8x128xf32>
    %115 = arith.addf %91, %114 : vector<8x128xf32>
    %c0_51 = arith.constant 0 : index
    %c0_52 = arith.constant 0 : index
    %116 = vector.load %arg8[%c0_51, %c0_52] : memref<1x128xbf16, #tpu.memory_space<vmem>>, vector<1x128xbf16>
    %117 = arith.extf %116 : vector<1x128xbf16> to vector<1x128xf32>
    %118 = vector.broadcast %117 : vector<1x128xf32> to vector<8x128xf32>
    %119 = arith.addf %115, %118 : vector<8x128xf32>
    %120 = arith.extf %7 : vector<8x128xbf16> to vector<8x128xf32>
    %121 = arith.addf %120, %119 : vector<8x128xf32>
    %c0_53 = arith.constant 0 : index
    %c0_54 = arith.constant 0 : index
    %122 = vector.load %arg9[%c0_53, %c0_54] : memref<1x128xbf16, #tpu.memory_space<vmem>>, vector<1x128xbf16>
    %123 = arith.extf %122 : vector<1x128xbf16> to vector<1x128xf32>
    %c0_55 = arith.constant 0 : index
    %c0_56 = arith.constant 0 : index
    %124 = vector.load %arg10[%c0_55, %c0_56] : memref<1x128xbf16, #tpu.memory_space<vmem>>, vector<1x128xbf16>
    %125 = arith.extf %124 : vector<1x128xbf16> to vector<1x128xf32>
    %cst_57 = arith.constant dense<0.000000e+00> : vector<8xf32>
    %126 = vector.multi_reduction <add>, %121, %cst_57 [1] : vector<8x128xf32> to vector<8xf32>
    %127 = vector.shape_cast %126 : vector<8xf32> to vector<8x1xf32>
    %cst_58 = arith.constant 1.280000e+02 : f32
    %128 = vector.broadcast %cst_58 : f32 to vector<8x1xf32>
    %129 = arith.divf %127, %128 : vector<8x1xf32>
    %130 = vector.broadcast %129 : vector<8x1xf32> to vector<8x128xf32>
    %131 = arith.subf %121, %130 : vector<8x128xf32>
    %132 = arith.mulf %131, %131 : vector<8x128xf32>
    %cst_59 = arith.constant dense<0.000000e+00> : vector<8xf32>
    %133 = vector.multi_reduction <add>, %132, %cst_59 [1] : vector<8x128xf32> to vector<8xf32>
    %134 = vector.shape_cast %133 : vector<8xf32> to vector<8x1xf32>
    %cst_60 = arith.constant 1.280000e+02 : f32
    %135 = vector.broadcast %cst_60 : f32 to vector<8x1xf32>
    %136 = arith.divf %134, %135 : vector<8x1xf32>
    %cst_61 = arith.constant 9.99999974E-6 : f32
    %137 = vector.broadcast %cst_61 : f32 to vector<8x1xf32>
    %138 = arith.addf %136, %137 : vector<8x1xf32>
    %139 = math.rsqrt %138 : vector<8x1xf32>
    %140 = vector.broadcast %139 : vector<8x1xf32> to vector<8x128xf32>
    %141 = arith.mulf %131, %140 : vector<8x128xf32>
    %142 = vector.broadcast %123 : vector<1x128xf32> to vector<8x128xf32>
    %143 = arith.mulf %141, %142 : vector<8x128xf32>
    %144 = vector.broadcast %125 : vector<1x128xf32> to vector<8x128xf32>
    %145 = arith.addf %143, %144 : vector<8x128xf32>
    %146 = arith.truncf %145 : vector<8x128xf32> to vector<8x128xbf16>
    %c0_62 = arith.constant 0 : index
    %c0_63 = arith.constant 0 : index
    %c0_64 = arith.constant 0 : index
    %147 = vector.load %arg11[%c0_62, %c0_63, %c0_64] : memref<1x8x128xbf16, #tpu.memory_space<vmem>>, vector<1x8x128xbf16>
    %148 = vector.shape_cast %147 : vector<1x8x128xbf16> to vector<8x128xbf16>
    %149 = vector.shape_cast %146 : vector<8x128xbf16> to vector<1x8x128xbf16>
    tpu.vector_store %arg11[%c0_62, %c0_63, %c0_64], %149 {strides = array<i32>} : memref<1x8x128xbf16, #tpu.memory_space<vmem>>, vector<1x8x128xbf16>,
    return
  }
  func.func @transform_0(%arg0: i32, %arg1: i32) -> (i32, i32, i32) {
    %c0_i32 = arith.constant 0 : i32
    %c0_i32_0 = arith.constant 0 : i32
    %c0_i32_1 = arith.constant 0 : i32
    return %arg0, %c0_i32, %c0_i32_0 : i32, i32, i32
  }
  func.func @transform_1(%arg0: i32, %arg1: i32) -> (i32, i32) {
    %c0_i32 = arith.constant 0 : i32
    %c0_i32_0 = arith.constant 0 : i32
    %c0_i32_1 = arith.constant 0 : i32
    return %c0_i32, %c0_i32_0 : i32, i32
  }
  func.func @transform_2(%arg0: i32, %arg1: i32) -> (i32, i32) {
    %c0_i32 = arith.constant 0 : i32
    %c0_i32_0 = arith.constant 0 : i32
    %c0_i32_1 = arith.constant 0 : i32
    return %c0_i32, %c0_i32_0 : i32, i32
  }
  func.func @transform_3(%arg0: i32, %arg1: i32) -> (i32, i32) {
    %c0_i32 = arith.constant 0 : i32
    %c0_i32_0 = arith.constant 0 : i32
    %c0_i32_1 = arith.constant 0 : i32
    return %c0_i32, %c0_i32_0 : i32, i32
  }
  func.func @transform_4(%arg0: i32, %arg1: i32) -> (i32, i32) {
    %c0_i32 = arith.constant 0 : i32
    %c0_i32_0 = arith.constant 0 : i32
    %c0_i32_1 = arith.constant 0 : i32
    return %c0_i32, %c0_i32_0 : i32, i32
  }
  func.func @transform_5(%arg0: i32, %arg1: i32) -> (i32, i32) {
    %c0_i32 = arith.constant 0 : i32
    %c0_i32_0 = arith.constant 0 : i32
    %c0_i32_1 = arith.constant 0 : i32
    return %c0_i32, %c0_i32_0 : i32, i32
  }
  func.func @transform_6(%arg0: i32, %arg1: i32) -> (i32, i32) {
    %c0_i32 = arith.constant 0 : i32
    %c0_i32_0 = arith.constant 0 : i32
    %c0_i32_1 = arith.constant 0 : i32
    return %c0_i32, %c0_i32_0 : i32, i32
  }
  func.func @transform_7(%arg0: i32, %arg1: i32) -> (i32, i32) {
    %c0_i32 = arith.constant 0 : i32
    %c0_i32_0 = arith.constant 0 : i32
    %c0_i32_1 = arith.constant 0 : i32
    return %c0_i32, %c0_i32_0 : i32, i32
  }
  func.func @transform_8(%arg0: i32, %arg1: i32) -> (i32, i32) {
    %c0_i32 = arith.constant 0 : i32
    %c0_i32_0 = arith.constant 0 : i32
    %c0_i32_1 = arith.constant 0 : i32
    return %c0_i32, %c0_i32_0 : i32, i32
  }
  func.func @transform_9(%arg0: i32, %arg1: i32) -> (i32, i32, i32) {
    %c0_i32 = arith.constant 0 : i32
    %c0_i32_0 = arith.constant 0 : i32
    return %arg0, %arg1, %c0_i32 : i32, i32, i32
  }
  func.func @transform_10(%arg0: i32, %arg1: i32) -> (i32, i32, i32, i32) {
    %c0_i32 = arith.constant 0 : i32
    %c0_i32_0 = arith.constant 0 : i32
    %c0_i32_1 = arith.constant 0 : i32
    return %arg0, %c0_i32, %arg1, %c0_i32_0 : i32, i32, i32, i32
  }
}

</mosaic_0001>

<bundles_post_ra>
// kernel: tpu_custom_call.1
= control target key start
LH: loop header
LB: loop body
LE: loop exit
PB: predicated region body
PF: predicated region fallthrough
CT: control target
= control target key end

     0   :  { %s2812_s0 = inlined_call_operand.hbm [shape: bf16[2,8,128], index: 0, kind: input, shape index: {}]   ;;  %s2813_s1 = inlined_call_operand.hbm [shape: bf16[128,128], index: 1, kind: input, shape index: {}]   ;;  %s2814_s2 = inlined_call_operand.vmem [shape: bf16[1,128], index: 2, kind: input, shape index: {}]   ;;  %s2815_s3 = inlined_call_operand.hbm [shape: bf16[128,256], index: 3, kind: input, shape index: {}]   ;;  %s2816_s4 = inlined_call_operand.vmem [shape: bf16[1,256], index: 4, kind: input, shape index: {}]   ;;  %s2817_s5 = inlined_call_operand.hbm [shape: bf16[128,128], index: 5, kind: input, shape index: {}]   ;;  %s2818_s6 = inlined_call_operand.vmem [shape: bf16[1,128], index: 6, kind: input, shape index: {}]   ;;  %s2819_s7 = inlined_call_operand.vmem [shape: bf16[1,128], index: 7, kind: input, shape index: {}]   ;;  %s2820_s8 = inlined_call_operand.vmem [shape: bf16[1,128], index: 8, kind: input, shape index: {}]   ;;  %s2821_s9 = inlined_call_operand.hbm [shape: bf16[2,8,128], index: 9, kind: output, shape index: {0}]   ;;  %s2822_s10 = inlined_call_operand.hbm [shape: bf16[2,4,8,8], index: 10, kind: output, shape index: {1}]  }
   0x1   :  { %2833 = sst [smem:[#allocation21_spill]] %s2813_s1 }
   0x2   :  { %2834 = sst [smem:[#allocation22_spill]] %s2819_s7 }
   0x3   :  { %2835 = sst [smem:[#allocation23_spill]] %s2820_s8 }
   0x4   :  { %2836 = sst [smem:[#allocation24_spill]] %s2821_s9 }
   0x5   :  { %2837 = sst [smem:[#allocation25_spill]] %s2822_s10 }
   0x6   :  { %16 = vsyncpa [#allocation4], 0 }
   0x7   :  { %18 = vsyncpa [#allocation4 + $0x1], 0 }
   0x8   :  { %19 = vsyncpa [#allocation7], 0 }
   0x9   :  { %20 = vsyncpa [#allocation10], 0 }
   0xa   :  { %21 = vsyncpa [#allocation5], 0 }
   0xb   :  { %23 = vsyncpa [#allocation5 + $0x1], 0 }
   0xc   :  { %24 = vsyncpa [#allocation13], 0 }
   0xd   :  { %26 = vsyncpa [#allocation13 + $0x1], 0  ;;  %s2342_s13 = smov 0   ;;  %s2344_s14 = smov 0  }
   0xe   :  { %s2346_s15 = smov 0   ;;  %s2348_s16 = smov 0  }
   0xf   :  { %s2350_s17 = smov 0   ;;  %s2352_s18 = smov 0  }
  0x10 LB: > { %2838 = sst [smem:[#allocation19_spill]] %s2248_s13  ;;  %s1648_s19 = sadd.s32 4294967295, %s2268_s18   ;;  %s2268_s18 = sphi %s2352_s18, %s32_s18   ;;  %s2264_s17 = sphi %s2350_s17, %s2869_s17   ;;  %s2260_s16 = sphi %s2348_s16, %s2868_s16   ;;  %s2256_s15 = sphi %s2346_s15, %s2867_s15   ;;  %s2252_s14 = sphi %s2344_s14, %s2866_s14   ;;  %s2248_s13 = sphi %s2342_s13, %s2865_s13  }
  0x11   : > { %s1649_s20 = sadd.s32 4294967294, %s2268_s18   ;;  %p64_p0 = scmp.ne.s32.totalorder %s2252_s14, %s2248_s13 }
  0x12   : > { %p2376_p1 = scmp.eq.s32.totalorder %s1648_s19, 0  ;;  %p2380_p2 = scmp.eq.s32.totalorder %s1648_s19, 1 }
  0x13   : > { %p264_p3 = scmp.eq.s32.totalorder %s1649_s20, 1  ;;  %p1650_p5 = scmp.ge.s32.totalorder %s2268_s18, 1 }
  0x14   : > { %s2839_s21 = scalar_select %p2376_p1, 1, 0 }
  0x15   : > { %s2840_s22 = scalar_select %p2380_p2, 1, 0 }
  0x16   : > { %p2386_p4 = por %p2376_p1, %p64_p0  ;;  %p2391_p6 = por %p264_p3, %p64_p0 }
  0x17   : > { %p299_p7 = scmp.lt.s32.totalorder %s2268_s18, 3  ;;  %s2270_s26 = smov [#allocation6]  }
  0x18   : > { %s2841_s23 = scalar_select %p2386_p4, 1, 0 }
  0x19   : > { %s2842_s24 = scalar_select %p2391_p6, 1, 0 }
  0x1a   : > { %p2396_p8 = pnand %p1650_p5, %p299_p7  ;;  %s311_s27 = sshll.u32 %s2270_s26, 4  ;;  %s2400_s27 = int_to_ptr.vmem [resolvable:$true] %s311_s27 }
  0x1b   : > { %2843 = sst [smem:[#allocation20_spill]] %s2842_s24  ;;  %s2271_s29 = smov [#allocation8]  }
  0x1c   : > { %s2844_s25 = scalar_select %p2396_p8, 1, 0 }
  0x1d   : > { %p1881_p9 = pneg %p2396_p8  ;;  %s327_s30 = sshll.u32 %s2271_s29, 4  ;;  %s2411_s30 = int_to_ptr.vmem [resolvable:$true] %s327_s30 }
  0x1e   : > { %s2846_s1 = sld [smem:[#allocation21_spill]] }
  0x1f   : > { %p2407_p11 = pnand %p1881_p9, %p2376_p1 }
  0x21   : > { %p2421_p13 = pneg %p2407_p11 }
  0x24   : > { %s2032_s19 = scalar_lea.hbm %s2846_s1, 1024 }
  0x25   : > { %p2033_p12 = scmp.ne.s32.totalorder %s2846_s1, %s2032_s19  ;;  %p2039_p5 = scmp.lt.u32.totalorder %s2032_s19, %s2846_s1 }
  0x27   : > { %p2035_p0 = pnand %p2421_p13, %p2033_p12 }
  0x29   : > { %p2036_p3 = pneg %p2035_p0 }
  0x2b   : > { %p2041_p7 = pnand %p2039_p5, %p2036_p3 }
  0x2d   : > { %2044 = shalt.err (!%p2041_p7)
}
  0x2e   : > { %s2045_s11 = scalar_lea.vmem %s2400_s27, 1024  ;;  %p2053_p1 = scmp.lt.s32.totalorder %s2400_s27, %s2400_s27 }
  0x2f   : > { %p2046_p9 = scmp.ne.s32.totalorder %s2400_s27, %s2045_s11  ;;  %p2054_p4 = scmp.lt.s32.totalorder %s2045_s11, %s2045_s11 }
  0x31   : > { %p2048_p10 = pnand %p2046_p9, %p2421_p13  ;;  %p2055_p12 = por %p2054_p4, %p2053_p1 }
  0x33   : > { %p2049_p6 = pneg %p2048_p10 }
  0x35   : > { %p2056_p0 = pnand %p2055_p12, %p2049_p6 }
  0x37   : > { %2059 = shalt.err (!%p2056_p0)
}
  0x38   : > { %s2830_s12 = smov 64   ;;  %s2831_s13 = smov 4  }
  0x39   : > { %1884 = dma.hbm_to_vmem [thread:$0]  (!%p2407_p11), %s2846_s1, 1024, %s2400_s27, [#allocation7], %s2830_s12, %s2830_s12, %s2831_s13  }
  0x3a   : > { %s2060_s11 = scalar_lea.hbm %s2815_s3, 2048 }
  0x3b   : > { %p2061_p1 = scmp.ne.s32.totalorder %s2815_s3, %s2060_s11  ;;  %p2067_p10 = scmp.lt.u32.totalorder %s2060_s11, %s2815_s3 }
  0x3d   : > { %p2063_p4 = pnand %p2061_p1, %p2421_p13 }
  0x3f   : > { %p2064_p6 = pneg %p2063_p4 }
  0x41   : > { %p2069_p3 = pnand %p2067_p10, %p2064_p6 }
  0x43   : > { %2072 = shalt.err (!%p2069_p3)
}
  0x44   : > { %s2073_s27 = scalar_lea.vmem %s2411_s30, 2048  ;;  %p2081_p12 = scmp.lt.s32.totalorder %s2411_s30, %s2411_s30 }
  0x45   : > { %p2074_p5 = scmp.ne.s32.totalorder %s2411_s30, %s2073_s27  ;;  %p2082_p0 = scmp.lt.s32.totalorder %s2073_s27, %s2073_s27 }
  0x47   : > { %p2076_p7 = pnand %p2074_p5, %p2421_p13  ;;  %p2083_p1 = por %p2082_p0, %p2081_p12 }
  0x49   : > { %p2077_p9 = pneg %p2076_p7 }
  0x4b   : > { %p2084_p4 = pnand %p2083_p1, %p2077_p9 }
  0x4d   : > { %2087 = shalt.err (!%p2084_p4)
}
  0x4e   : > { %s2274_s8 = smov 128   ;;  %s2275_s7 = smov 8  }
  0x4f   : > { %1887 = dma.hbm_to_vmem [thread:$0]  (!%p2407_p11), %s2815_s3, 2048, %s2411_s30, [#allocation7], %s2274_s8, %s2274_s8, %s2275_s7  }
  0x50   : > { %s2276_s19 = smov [#allocation9]   ;;  %s2088_s11 = scalar_lea.hbm %s2817_s5, 1024 }
  0x51   : > { %s343_s20 = sshll.u32 %s2276_s19, 4  ;;  %p2089_p6 = scmp.ne.s32.totalorder %s2817_s5, %s2088_s11  ;;  %s344_s20 = int_to_ptr.vmem [resolvable:$true] %s343_s20 }
  0x52   : > { %p2095_p5 = scmp.lt.u32.totalorder %s2088_s11, %s2817_s5 }
  0x53   : > { %p2091_p10 = pnand %p2089_p6, %p2421_p13 }
  0x55   : > { %p2092_p3 = pneg %p2091_p10 }
  0x57   : > { %p2097_p7 = pnand %p2095_p5, %p2092_p3 }
  0x59   : > { %2100 = shalt.err (!%p2097_p7)
}
  0x5a   : > { %s2101_s30 = scalar_lea.vmem %s344_s20, 1024  ;;  %p2109_p1 = scmp.lt.s32.totalorder %s344_s20, %s344_s20 }
  0x5b   : > { %p2102_p9 = scmp.ne.s32.totalorder %s344_s20, %s2101_s30  ;;  %p2110_p4 = scmp.lt.s32.totalorder %s2101_s30, %s2101_s30 }
  0x5d   : > { %p2104_p12 = pnand %p2102_p9, %p2421_p13  ;;  %p2111_p8 = por %p2110_p4, %p2109_p1 }
  0x5f   : > { %p2105_p0 = pneg %p2104_p12 }
  0x61   : > { %p2112_p2 = pnand %p2111_p8, %p2105_p0 }
  0x63   : > { %2115 = shalt.err (!%p2112_p2)
}
  0x64   : > { %s2848_s12 = smov 4   ;;  %s2849_s8 = smov 64  }
  0x65   : > { %1890 = dma.hbm_to_vmem [thread:$0]  (!%p2407_p11), %s2817_s5, 1024, %s344_s20, [#allocation10], %s2849_s8, %s2849_s8, %s2848_s12  }
  0x66   : > { %s44_s24 = sadd.s32 1, %s2264_s17  ;;  %s51_s28 = sadd.s32 1, %s2256_s15 }
  0x67   : > { %p46_p2 = scmp.ge.s32.totalorder %s44_s24, 2  ;;  %p58_p8 = scmp.ne.s32.totalorder %s2256_s15, %s2252_s14 }
  0x68   : > { %p59_p13 = scmp.eq.s32.totalorder %s2268_s18, 0  ;;  %p2851_p10 = scmp.ne.s32.totalorder %s2840_s22, 0 }
  0x69   : > { %s2871_s24 = smov (%p46_p2, %s44_s24), 0  ;;  %p1905_p11 = scmp.lt.s32.totalorder %s2268_s18, 2 }
  0x6a   : > { %p2496_p6 = por %p59_p13, %p58_p8  ;;  %p2502_p3 = por %p2851_p10, %p58_p8 }
  0x6b   : > { %s48_s10 = ssub.s32 %s2264_s17, %s2871_s24  ;;  %s366_s19 = sand.u32 1, %s2256_s15  }
  0x6c   : > { %p49_p5 = scmp.eq.s32.totalorder %s48_s10, 0  ;;  %s1655_s20 = sshll.u32 %s366_s19, 2 }
  0x6d   : > { %s1656_s29 = sshll.u32 %s2264_s17, 6  ;;  %s370_s22 = scalar_lea.vmem [#allocation3], %s1655_s20 }
  0x6e   : > { %s2511_s26 = scalar_select %p49_p5, %s2256_s15, %s51_s28  }
  0x6f   : > { %s2517_s30 = scalar_lea.hbm %s2812_s0, %s1656_s29  ;;  %s377_s12 = sshll.u32 %s370_s22, 4  ;;  %s2519_s12 = int_to_ptr.vmem [resolvable:$true] %s377_s12 }
  0x70   : > { %p2523_p7 = pnand %p1905_p11, %p2496_p6  ;;  %s367_s1 = scalar_lea.sflag [#allocation4], %s366_s19 }
  0x71   : > { %s2116_s13 = scalar_lea.hbm %s2517_s30, 64  ;;  %s2121_s20 = scalar_lea.hbm %s2812_s0, 128 }
  0x72   : > { %p2117_p9 = scmp.ne.s32.totalorder %s2517_s30, %s2116_s13  ;;  %p2118_p12 = pneg %p2523_p7 }
  0x73   : > { %p2122_p4 = scmp.lt.u32.totalorder %s2517_s30, %s2812_s0  ;;  %p2123_p2 = scmp.lt.u32.totalorder %s2121_s20, %s2116_s13 }
  0x74   : > { %p2119_p0 = pnand %p2118_p12, %p2117_p9  ;;  %p2125_p13 = scmp.lt.u32.totalorder %s2116_s13, %s2517_s30 }
  0x75   : > { %p2124_p8 = por %p2123_p2, %p2122_p4 }
  0x76   : > { %p2120_p1 = pneg %p2119_p0 }
  0x77   : > { %p2126_p6 = por %p2125_p13, %p2124_p8 }
  0x79   : > { %p2127_p10 = pnand %p2126_p6, %p2120_p1 }
  0x7b   : > { %2130 = shalt.err (!%p2127_p10)
}
  0x7c   : > { %s2131_s19 = scalar_lea.vmem %s2519_s12, 64  ;;  %s2277_s11 = smov [#allocation3]  }
  0x7d   : > { %p2132_p11 = scmp.ne.s32.totalorder %s2519_s12, %s2131_s19  ;;  %s2136_s27 = sshll.u32 %s2277_s11, 4  ;;  %s2137_s27 = int_to_ptr.vmem [resolvable:$false] %s2136_s27 }
  0x7e   : > { %s2138_s22 = scalar_lea.vmem %s2137_s27, 128  ;;  %p2139_p0 = scmp.lt.s32.totalorder %s2519_s12, %s2137_s27 }
  0x7f   : > { %p2134_p5 = pnand %p2132_p11, %p2118_p12  ;;  %p2140_p4 = scmp.lt.s32.totalorder %s2138_s22, %s2131_s19 }
  0x81   : > { %p2135_p9 = pneg %p2134_p5  ;;  %p2141_p2 = por %p2140_p4, %p2139_p0 }
  0x83   : > { %p2142_p8 = pnand %p2141_p2, %p2135_p9 }
  0x85   : > { %2145 = shalt.err (!%p2142_p8)
}
  0x86   : > { %1894 = dma.hbm_to_vmem [thread:$0]  (!%p2523_p7), %s2517_s30, 64, %s2519_s12, %s367_s1  }
  0x87   : > { %p2854_p1 = scmp.ne.s32.totalorder %s2844_s25, 0 }
  0x88   : > { %s2555_s13 = sand.u32 (!%p2854_p1), 1, %s2252_s14   ;;  %p2855_p12 = scmp.ne.s32.totalorder (!%p2854_p1), %s2841_s23, 0 }
  0x89   : > { %386 = sbr.rel (%p2854_p1) target bundleno = 3107 (0xc23), region = 56  ;;  %s1658_s28 = sshll.u32 (!%p2854_p1), %s2555_s13, 2 }
  0x8a   : > { %s389_s10 = scalar_lea.sflag (!%p2854_p1), [#allocation4], %s2555_s13  ;;  %s2561_s20 = scalar_lea.vmem (!%p2854_p1), [#allocation3], %s1658_s28 }
  0x90   : > { %2227 = dma.done.wait (%p2855_p12), %s389_s10, 64  }
  0x91   : > { %2229 = vsyncadd (%p2855_p12), %s389_s10, 4294967232  ;;  %p2856_p7 = scmp.ne.s32.totalorder %s2839_s21, 0 }
  0x93   : > { %2231 = dma.done.wait (%p2856_p7), [#allocation7], 3072  }
  0x94   : > { %2233 = vsyncadd (%p2856_p7), [#allocation7], 4294964224 }
  0x95   : > { %2235 = dma.done.wait (%p2856_p7), [#allocation10], 1024  }
  0x96   : > { %2237 = vsyncadd (%p2856_p7), [#allocation10], 4294966272  ;;  %v2278_v0 = vmov 0.0   ;;  %v2279_v1 = vmov 0   ;;  %vm2280_vm0 = vmmov 0   ;;  %v1986_v8 = vld [vmem:[#allocation6] sm:$0xff]   ;;  %v471_v28 = vlaneseq }
  0x97   : > { %1763 = vmatprep.subr.bf16.mxu1 %v2278_v0  ;;  %601 = vmatprep.mubr.bf16.mxu0 %v2279_v1  ;;  %v1972_v2 = vld [vmem:[#allocation8 + $0x4] ss:$8 sps:$4 sm:$0xff]   ;;  %v1974_v3 = vld [vmem:[#allocation8] ss:$8 sps:$4 sm:$0xff]   ;;  %v1975_v4 = vld [vmem:[#allocation8 + $0x14] ss:$8 sps:$4 sm:$0xff]  }
  0x98   : > { %1779 = vmatprep.mubr.msk.bf16.mxu1 %vm2280_vm0, %v2278_v0  ;;  %569 = vmatprep.subr.bf16.mxu0 %v1972_v2  ;;  %v1977_v5 = vld [vmem:[#allocation8 + $0x10] ss:$8 sps:$4 sm:$0xff]   ;;  %v1978_v6 = vld [vmem:[#allocation8 + $0x24] ss:$8 sps:$4 sm:$0xff]   ;;  %v1980_v7 = vld [vmem:[#allocation8 + $0x20] ss:$8 sps:$4 sm:$0xff]  }
  0x99   : > { %570 = vmatpush1.bf16.msra.mxu0 %v1974_v3  ;;  %v1981_v9 = vld [vmem:[#allocation8 + $0x34] ss:$8 sps:$4 sm:$0xff]   ;;  %1764 = vmatpush3.bf16.msra.mxu1 %v1986_v8  ;;  %v1990_v10 = vld [vmem:[#allocation6 + $0x8] sm:$0xff]   ;;  %v1983_v11 = vld [vmem:[#allocation8 + $0x30] ss:$8 sps:$4 sm:$0xff]   ;;  %v472_v29 = vshrl.u32 %v471_v28, 7 }
  0x9a   : > { %571 = vmatprep.subr.bf16.mxu0 %v1975_v4  ;;  %1765 = vmatprep.subr.bf16.mxu1 %v2278_v0  ;;  %v1984_v12 = vld [vmem:[#allocation8 + $0x44] ss:$8 sps:$4 sm:$0xff]   ;;  %v1994_v13 = vld [vmem:[#allocation6 + $0x10] sm:$0xff]   ;;  %v1987_v14 = vld [vmem:[#allocation8 + $0x40] ss:$8 sps:$4 sm:$0xff]   ;;  %vm736_vm1 = vcmask 261120  }
  0x9b   : > { %v1988_v15 = vld [vmem:[#allocation8 + $0x54] ss:$8 sps:$4 sm:$0xff]   ;;  %v1991_v17 = vld [vmem:[#allocation8 + $0x50] ss:$8 sps:$4 sm:$0xff]   ;;  %v1992_v18 = vld [vmem:[#allocation8 + $0x64] ss:$8 sps:$4 sm:$0xff]  }
  0x9c   : > { %v1998_v16 = vld [vmem:[#allocation6 + $0x18] sm:$0xff]   ;;  %v2000_v19 = vld [vmem:[#allocation6 + $0x20] sm:$0xff]   ;;  %v2001_v22 = vld [vmem:[#allocation6 + $0x28] sm:$0xff]   ;;  %v2599_v32 = vsub.s32 0, %v472_v29  ;;  %v477_v33 = vsub.s32 2, %v472_v29  ;;  %vm801_vm2 = vcmask 1043456  }
  0x9d   : > { %572 = vmatpush1.bf16.msra.mxu0 %v1977_v5  ;;  %1766 = vmatpush3.bf16.msra.mxu1 %v1990_v10  ;;  %v1995_v20 = vld [vmem:[#allocation8 + $0x60] ss:$8 sps:$4 sm:$0xff]   ;;  %v1996_v21 = vld [vmem:[#allocation8 + $0x74] ss:$8 sps:$4 sm:$0xff]   ;;  %v1999_v23 = vld [vmem:[#allocation8 + $0x70] ss:$8 sps:$4 sm:$0xff]  }
  0x9e   : > { %573 = vmatprep.subr.bf16.mxu0 %v1978_v6  ;;  %1767 = vmatprep.subr.bf16.mxu1 %v2278_v0  ;;  %v2002_v24 = vld [vmem:[#allocation6 + $0x30] sm:$0xff]   ;;  %v451_v25 = vld [vmem:[%s2561_s20] sm:$0xf]  ;;  %s2281_s12 = smov 96   ;;  %vm783_vm3 = vcmask 64512   ;;  %s2282_s8 = smov 64  }
  0x9f   : > { %v2003_v26 = vld [vmem:[#allocation6 + $0x38] sm:$0xff]   ;;  %v468_v30 = vld [vmem:[%s2816_s4] sm:$0x3]  ;;  %s1663_s1 = sshll.u32 %s2555_s13, 4  ;;  %vm796_vm4 = vcmask 60416   ;;  %s2283_s29 = smov 32  }
  0xa0   : > { %v2590_v27 = vld [vmem:[%s2561_s20] sm:$0xf]  ;;  %v469_v31 = vunpack.c.l.bf16 %v468_v30  ;;  %v637_v38 = vld [vmem:[%s2814_s2] sm:$0x1]  ;;  %s2644_s7 = scalar_lea.vmem [#allocation12], %s1663_s1  ;;  %s1720_s27 = sshll.u32 %s2260_s16, 8 }
  0xa1   : > { %574 = vmatpush1.bf16.msra.mxu0 %v1980_v7  ;;  %1768 = vmatpush3.bf16.msra.mxu1 %v1994_v13  ;;  %v638_v44 = vunpack.c.l.bf16 %v637_v38  ;;  %s1501_s22 = sshll.u32 %s2644_s7, 4  ;;  %s2857_s21 = sld [smem:[#allocation25_spill]]  ;;  %s2721_s22 = int_to_ptr.vmem [resolvable:$true] %s1501_s22 }
  0xa2   : > { %575 = vmatprep.subr.bf16.mxu0 %v1981_v9  ;;  %1769 = vmatprep.subr.bf16.mxu1 %v2278_v0  ;;  %v474_v34 = vrot.slane %v469_v31, %v2599_v32  ;;  %v478_v35 = vrot.slane %v469_v31, %v477_v33  ;;  %s1473_s25 = scalar_lea.sflag [#allocation13], %s2555_s13  ;;  %s2146_s30 = scalar_lea.vmem %s2721_s22, 256 }
  0xa3   : > { %v642_v47 = vrot.slane %v638_v44, %v2599_v32  ;;  %p2147_p13 = scmp.ne.s32.totalorder %s2721_s22, %s2146_s30 }
  0xa4   : > { %v484_v36 = vrot.slane %v474_v34, %v2599_v32  ;;  %v488_v37 = vrot.slane %v478_v35, %v2599_v32  ;;  %v2006_v34 = vld [vmem:[#allocation9] sm:$0xff]  }
  0xa5   : > { %576 = vmatpush1.bf16.msra.mxu0 %v1983_v11  ;;  %1770 = vmatpush3.bf16.msra.mxu1 %v1998_v16  ;;  %p2148_p6 = pnand %p2147_p13, %p2502_p3 }
  0xa6   : > { %577 = vmatprep.subr.bf16.mxu0 %v1984_v12  ;;  %1771 = vmatprep.subr.bf16.mxu1 %v2278_v0 }
  0xa7   : > { %s2719_s23 = scalar_lea.hbm %s2857_s21, %s1720_s27  ;;  %p2149_p10 = pneg %p2148_p6 }
  0xa9   : > { %578 = vmatpush1.bf16.msra.mxu0 %v1987_v14  ;;  %1772 = vmatpush3.bf16.msra.mxu1 %v2000_v19 }
  0xaa   : > { %579 = vmatprep.subr.bf16.mxu0 %v1988_v15  ;;  %1773 = vmatprep.subr.bf16.mxu1 %v2278_v0 }
  0xad   : > { %580 = vmatpush1.bf16.msra.mxu0 %v1991_v17  ;;  %1774 = vmatpush3.bf16.msra.mxu1 %v2001_v22 }
  0xae   : > { %581 = vmatprep.subr.bf16.mxu0 %v1992_v18  ;;  %1775 = vmatprep.subr.bf16.mxu1 %v2278_v0 }
  0xb1   : > { %582 = vmatpush1.bf16.msra.mxu0 %v1995_v20  ;;  %1776 = vmatpush3.bf16.msra.mxu1 %v2002_v24 }
  0xb2   : > { %583 = vmatprep.subr.bf16.mxu0 %v1996_v21  ;;  %1777 = vmatprep.subr.bf16.mxu1 %v2278_v0 }
  0xb5   : > { %584 = vmatpush1.bf16.msra.mxu0 %v1999_v23  ;;  %1778 = vmatpush3.bf16.msra.mxu1 %v2003_v26  ;;  %v2009_v26 = vld [vmem:[#allocation9 + $0x18] sm:$0xff]  }
  0xb6   : > { %1783 = vmatprep.subr.bf16.mxu0 %v2278_v0  ;;  %1789 = vmatprep.subr.bf16.mxu1 %v2278_v0 }
  0xb8   : > { %602 = vmatmul.mubr.bf16.vlgmr.msra.gmra.mrb[0].mxu0 %v451_v25  ;;  %1780 = vmatmul.mubr.bf16.vlgmr.msra.gmra.mrb[0].mxu1 %v2590_v27  ;;  %v2008_v25 = vld [vmem:[#allocation9 + $0x10] sm:$0xff]  }
  0xb9   : > { %1785 = vmatprep.mubr.msk.bf16.mxu0 %vm2280_vm0, %v2278_v0  ;;  %1791 = vmatprep.mubr.msk.bf16.mxu1 %vm2280_vm0, %v2278_v0 }
 0x18b   : > { %v603_v39 = vpop.f32.mrb[0].mxu0  ;;  %v725_v48 = vpop.f32.mrb[0].mxu1 }
 0x18c   : > { %v604_v40 = vadd.f32 %v603_v39, %v484_v36  ;;  %v605_v41 = vpop.f32.mrb[1].mxu0  ;;  %v1781_v49 = vpop.f32.mrb[1].mxu1  ;;  %v726_v52 = vadd.f32 %v725_v48, %v642_v47  ;;  %v2007_v36 = vld [vmem:[#allocation9 + $0x8] sm:$0xff]  }
 0x18d   : > { %v606_v42 = vadd.f32 %v605_v41, %v488_v37  ;;  %v607_v43 = vpop.f32.mrb[2].mxu0  ;;  %v728_v50 = vpop.f32.mrb[2].mxu1 }
 0x18e   : > { %v608_v45 = vpop.f32.mrb[3].mxu0  ;;  %v1782_v51 = vpop.f32.mrb[3].mxu1  ;;  %v731_v55 = vmul.f32 0.35355338, %v726_v52 }
 0x18f   : > { %v1724_v46 = vpack.c.bf16 %v606_v42, %v604_v40 }
 0x190   : > { %v2616_v59 = vpack.c.bf16 %v731_v55, %v731_v55 }
 0x191   : > { %1725 = vst [vmem:[#allocation2] sm:$0xff] %v1724_v46  }
 0x198   : > { %v733_v53 = vld [vmem:[#allocation2] sm:$0xf]  ;;  %v735_v54 = vld [vmem:[#allocation2 + $0x4] sm:$0xf] }
 0x199   : > { %v741_v56 = vsel %vm736_vm1, %v733_v53, 0  ;;  %v803_v57 = vsel %vm801_vm2, %v735_v54, 0  ;;  %v2610_v58 = vcombine.low %v733_v53, %v733_v53  ;;  %v2632_v15 = vcombine.low %v735_v54, %v735_v54 }
 0x19a   : > { %1784 = vmatpush3.bf16.xpose.msra.mxu0 %v741_v56  ;;  %1790 = vmatpush3.bf16.msra.mxu1 %v803_v57 }
 0x19b   : > { %856 = vrot.lane.b32.xlu0 %v2610_v58, %s2281_s12  ;;  %1795 = vmatprep.subr.bf16.mxu0 %v2278_v0 }
 0x19c   : > { %1801 = vmatprep.subr.bf16.mxu1 %v2278_v0 }
 0x19f   : > { %851 = vrot.lane.b32.xlu0 %v2616_v59, %s2281_s12 }
 0x1a1   : > { %1786 = vmatmul.mubr.msk.bf16.vlgmr.msra.gmra.mrb[4].mxu0 %vm736_vm1, %v2616_v59 }
 0x1a2   : > { %1797 = vmatprep.mubr.msk.bf16.mxu0 %vm2280_vm0, %v2278_v0 }
 0x20d   : > { %v857_v60 = vpop.permute.xlu0 %856 }
 0x20e   : > { %v862_v61 = vsel %vm736_vm1, %v857_v60, 0 }
 0x20f   : > { %1796 = vmatpush3.bf16.xpose.msra.mxu0 %v862_v61 }
 0x210   : > { %1807 = vmatprep.subr.bf16.mxu0 %v2278_v0 }
 0x211   : > { %v852_v62 = vpop.permute.xlu0 %851 }
 0x216   : > { %1798 = vmatmul.mubr.msk.bf16.vlgmr.msra.gmra.mrb[8].mxu0 %vm736_vm1, %v852_v62 }
 0x217   : > { %1811 = vmatprep.mubr.msk.bf16.mxu0 %vm2280_vm0, %v2278_v0  ;;  %1808 = vmatpush3.bf16.msra.mxu0 %v2008_v25 }
 0x218   : > { %1809 = vmatprep.subr.bf16.mxu0 %v2278_v0 }
 0x21b   : > { %1810 = vmatpush3.bf16.msra.mxu0 %v2009_v26 }
 0x21c   : > { %1823 = vmatprep.subr.bf16.mxu0 %v2278_v0 }
 0x274   : > { %v777_v63 = vpop.f32.mrb[4].mxu0 }
 0x275   : > { %v1787_v1 = vpop.f32.mrb[5].mxu0  ;;  %v784_v2 = vsel %vm783_vm3, %v777_v63, -inf }
 0x276   : > { %785 = vmax.xlane.f32.xlu1 %v784_v2  ;;  %v780_v3 = vpop.f32.mrb[6].mxu0 }
 0x277   : > { %v1788_v4 = vpop.f32.mrb[7].mxu0 }
 0x2e9   : > { %v898_v5 = vpop.f32.mrb[8].mxu0 }
 0x2ea   : > { %v1799_v6 = vpop.f32.mrb[9].mxu0  ;;  %v904_v7 = vsel %vm783_vm3, %v898_v5, -inf }
 0x2eb   : > { %905 = vmax.xlane.f32.xlu1 %v904_v7  ;;  %v901_v8 = vpop.f32.mrb[10].mxu0 }
 0x2ec   : > { %v1800_v9 = vpop.f32.mrb[11].mxu0 }
 0x303   : > { %v786_v10 = vpop.xlane.xlu1 %785 }
 0x304   : > { %v787_v11 = vsub.f32 %v777_v63, %v786_v10  ;;  %v2010_v10 = vld [vmem:[#allocation9 + $0x20] sm:$0xff]  }
 0x306   : > { %v788_v12 = vmul.f32 1.442695, %v787_v11 }
 0x308   : > { %2014 = vpow2.f32 %v788_v12 }
 0x312   : > { %v2015_v13 = vpop.eup %2014 }
 0x313   : > { %v790_v14 = vsel %vm783_vm3, %v2015_v13, 0.0 }
 0x314   : > { %791 = vadd.xlane.f32.xlu0 %v790_v14 }
 0x32a   : > { %1148 = vrot.lane.b32.xlu0 %v2632_v15, %s2282_s8 }
 0x378   : > { %v906_v16 = vpop.xlane.xlu1 %905 }
 0x379   : > { %v907_v17 = vsub.f32 %v898_v5, %v906_v16 }
 0x37b   : > { %v908_v18 = vmul.f32 1.442695, %v907_v17 }
 0x37d   : > { %2016 = vpow2.f32 %v908_v18 }
 0x387   : > { %v2017_v19 = vpop.eup %2016 }
 0x388   : > { %v910_v20 = vsel %vm783_vm3, %v2017_v19, 0.0 }
 0x389   : > { %911 = vadd.xlane.f32.xlu1 %v910_v20 }
 0x39a   : > { %921 = vrot.lane.b32.xlu1 %v2632_v15, %s2281_s12  ;;  %s2284_s12 = smov [#allocation12]  }
 0x39b   : > { %s2150_s1 = sshll.u32 %s2284_s12, 4  ;;  %s2151_s1 = int_to_ptr.vmem [resolvable:$false] %s2150_s1 }
 0x39c   : > { %p2153_p11 = scmp.lt.s32.totalorder %s2721_s22, %s2151_s1 }
 0x39e   : > { %1086 = vrot.lane.b32.xlu1 %v2610_v58, %s2282_s8 }
 0x3a1   : > { %v792_v21 = vpop.xlane.xlu0 %791 }
 0x3a2   : > { %2018 = vrcp.f32 %v792_v21  ;;  %1084 = vrot.lane.b32.xlu1 %v2616_v59, %s2282_s8 }
 0x3a5   : > { %v1149_v37 = vpop.permute.xlu0 %1148 }
 0x3a6   : > { %v1154_v42 = vsel %vm801_vm2, %v1149_v37, 0 }
 0x3ac   : > { %v2019_v22 = vpop.eup %2018 }
 0x3ad   : > { %v794_v23 = vmul.f32 %v2019_v22, %v2015_v13 }
 0x3af   : > { %v795_v24 = vpack.c.bf16 %v794_v23, %v794_v23 }
 0x3b1   : > { %797 = vst.msk [vmem:[%s2644_s7] sm:$0xf] %vm796_vm4, %v795_v24  ;;  %1792 = vmatmul.mubr.msk.bf16.vlgmr.msra.gmra.mrb[4].mxu1 %vm783_vm3, %v795_v24 }
 0x3b2   : > { %1803 = vmatprep.mubr.msk.bf16.mxu1 %vm2280_vm0, %v2278_v0 }
 0x416   : > { %v912_v28 = vpop.xlane.xlu1 %911 }
 0x417   : > { %2020 = vrcp.f32 %v912_v28 }
 0x41a   : > { %v922_v29 = vpop.permute.xlu1 %921 }
 0x41b   : > { %v927_v30 = vsel %vm801_vm2, %v922_v29, 0 }
 0x41c   : > { %1802 = vmatpush3.bf16.msra.mxu1 %v927_v30 }
 0x41d   : > { %1815 = vmatprep.subr.bf16.mxu1 %v2278_v0 }
 0x41e   : > { %v1087_v44 = vpop.permute.xlu1 %1086 }
 0x41f   : > { %v1092_v49 = vsel %vm736_vm1, %v1087_v44, 0 }
 0x421   : > { %v2021_v31 = vpop.eup %2020 }
 0x422   : > { %v914_v33 = vmul.f32 %v2021_v31, %v2017_v19  ;;  %v1085_v51 = vpop.permute.xlu1 %1084 }
 0x424   : > { %v915_v35 = vpack.c.bf16 %v914_v33, %v914_v33 }
 0x426   : > { %1692 = vst.msk [vmem:[%s2644_s7 + $0x4] sm:$0xf] %vm796_vm4, %v915_v35  ;;  %1804 = vmatmul.mubr.msk.bf16.vlgmr.msra.gmra.mrb[8].mxu1 %vm783_vm3, %v915_v35  ;;  %v2012_v35 = vld [vmem:[#allocation9 + $0x30] sm:$0xff]  }
 0x427   : > { %1816 = vmatpush3.bf16.msra.mxu1 %v2006_v34  ;;  %1819 = vmatprep.mubr.msk.bf16.mxu1 %vm2280_vm0, %v2278_v0 }
 0x428   : > { %1817 = vmatprep.subr.bf16.mxu1 %v2278_v0 }
 0x42b   : > { %1818 = vmatpush3.bf16.msra.mxu1 %v2007_v36 }
 0x42c   : > { %1829 = vmatprep.subr.bf16.mxu1 %v2278_v0 }
 0x484   : > { %v839_v38 = vpop.f32.mrb[4].mxu1 }
 0x485   : > { %v845_v39 = vpack.c.bf16 %v839_v38, %v839_v38  ;;  %v1793_v40 = vpop.f32.mrb[5].mxu1 }
 0x486   : > { %v842_v41 = vpop.f32.mrb[6].mxu1 }
 0x487   : > { %v1794_v43 = vpop.f32.mrb[7].mxu1  ;;  %1820 = vmatmul.mubr.msk.bf16.vlgmr.msra.gmra.mrb[12].mxu1 %vm736_vm1, %v845_v39 }
 0x488   : > { %1830 = vmatpush3.bf16.msra.mxu1 %v1154_v42  ;;  %1831 = vmatprep.mubr.msk.bf16.mxu1 %vm2280_vm0, %v2278_v0 }
 0x489   : > { %1843 = vmatprep.subr.bf16.mxu1 %v2278_v0 }
 0x4f9   : > { %v963_v45 = vpop.f32.mrb[8].mxu1 }
 0x4fa   : > { %v969_v46 = vpack.c.bf16 %v963_v45, %v963_v45  ;;  %v1805_v47 = vpop.f32.mrb[9].mxu1 }
 0x4fb   : > { %v966_v48 = vpop.f32.mrb[10].mxu1 }
 0x4fc   : > { %v1806_v50 = vpop.f32.mrb[11].mxu1  ;;  %1812 = vmatmul.mubr.msk.bf16.vlgmr.msra.gmra.mrb[12].mxu0 %vm736_vm1, %v969_v46 }
 0x4fd   : > { %1824 = vmatpush3.bf16.xpose.msra.mxu0 %v1092_v49  ;;  %1825 = vmatprep.mubr.msk.bf16.mxu0 %vm2280_vm0, %v2278_v0 }
 0x4fe   : > { %1835 = vmatprep.subr.bf16.mxu0 %v2278_v0 }
 0x504   : > { %1826 = vmatmul.mubr.msk.bf16.vlgmr.msra.gmra.mrb[16].mxu0 %vm736_vm1, %v1085_v51  ;;  %v1430_v51 = vld [vmem:[%s2818_s6] sm:$0x1] }
 0x505   : > { %1839 = vmatprep.mubr.msk.bf16.mxu0 %vm2280_vm0, %v2278_v0  ;;  %1836 = vmatpush3.bf16.msra.mxu0 %v2010_v10 }
 0x506   : > { %1837 = vmatprep.subr.bf16.mxu0 %v2278_v0 }
 0x55a   : > { %v1078_v52 = vpop.f32.mrb[12].mxu1 }
 0x55b   : > { %v1821_v53 = vpop.f32.mrb[13].mxu1 }
 0x55c   : > { %v1081_v54 = vpop.f32.mrb[14].mxu1 }
 0x55d   : > { %v1822_v55 = vpop.f32.mrb[15].mxu1 }
 0x55e   : > { %v1437_v55 = vunpack.c.l.bf16 %v2590_v27 }
 0x5cf   : > { %v1023_v56 = vpop.f32.mrb[12].mxu0 }
 0x5d0   : > { %v2675_v57 = vadd.f32 %v1078_v52, %v1023_v56  ;;  %v1813_v60 = vpop.f32.mrb[13].mxu0  ;;  %v1431_v52 = vunpack.c.l.bf16 %v1430_v51 }
 0x5d1   : > { %v1026_v61 = vpop.f32.mrb[14].mxu0 }
 0x5d2   : > { %v1814_v62 = vpop.f32.mrb[15].mxu0  ;;  %v1435_v53 = vrot.slane %v1431_v52, %v2599_v32 }
 0x5d7   : > { %v1128_v63 = vpop.f32.mrb[16].mxu0 }
 0x5d8   : > { %v1827_v1 = vpop.f32.mrb[17].mxu0  ;;  %v1134_v2 = vsel %vm783_vm3, %v1128_v63, -inf }
 0x5d9   : > { %1135 = vmax.xlane.f32.xlu1 %v1134_v2  ;;  %v1131_v3 = vpop.f32.mrb[18].mxu0 }
 0x5da   : > { %v1828_v4 = vpop.f32.mrb[19].mxu0 }
 0x666   : > { %v1136_v5 = vpop.xlane.xlu1 %1135 }
 0x667   : > { %v1137_v6 = vsub.f32 %v1128_v63, %v1136_v5 }
 0x669   : > { %v1138_v7 = vmul.f32 1.442695, %v1137_v6 }
 0x66b   : > { %2022 = vpow2.f32 %v1138_v7 }
 0x675   : > { %v2023_v8 = vpop.eup %2022 }
 0x676   : > { %v1140_v9 = vsel %vm783_vm3, %v2023_v8, 0.0 }
 0x677   : > { %1141 = vadd.xlane.f32.xlu0 %v1140_v9 }
 0x68d   : > { %1259 = vrot.lane.b32.xlu0 %v2610_v58, %s2283_s29 }
 0x691   : > { %1257 = vrot.lane.b32.xlu0 %v2616_v59, %s2283_s29  ;;  %v2011_v59 = vld [vmem:[#allocation9 + $0x28] sm:$0xff]  }
 0x692   : > { %1838 = vmatpush3.bf16.msra.mxu0 %v2011_v59 }
 0x693   : > { %1849 = vmatprep.subr.bf16.mxu0 %v2278_v0 }
 0x704   : > { %v1142_v11 = vpop.xlane.xlu0 %1141 }
 0x705   : > { %2024 = vrcp.f32 %v1142_v11 }
 0x708   : > { %v1260_v14 = vpop.permute.xlu0 %1259 }
 0x709   : > { %v1265_v17 = vsel %vm736_vm1, %v1260_v14, 0 }
 0x70c   : > { %v1258_v58 = vpop.permute.xlu0 %1257 }
 0x70f   : > { %v2025_v12 = vpop.eup %2024 }
 0x710   : > { %v1144_v13 = vmul.f32 %v2025_v12, %v2023_v8 }
 0x712   : > { %v1145_v16 = vpack.c.bf16 %v1144_v13, %v1144_v13 }
 0x714   : > { %1702 = vst.msk [vmem:[%s2644_s7 + $0x8] sm:$0xf] %vm796_vm4, %v1145_v16  ;;  %1832 = vmatmul.mubr.msk.bf16.vlgmr.msra.gmra.mrb[16].mxu1 %vm783_vm3, %v1145_v16 }
 0x715   : > { %1844 = vmatpush3.bf16.xpose.msra.mxu1 %v1265_v17  ;;  %1845 = vmatprep.mubr.msk.bf16.mxu1 %vm2280_vm0, %v2278_v0 }
 0x716   : > { %1855 = vmatprep.subr.bf16.mxu1 %v2278_v0 }
 0x71c   : > { %1846 = vmatmul.mubr.msk.bf16.vlgmr.msra.gmra.mrb[20].mxu1 %vm736_vm1, %v1258_v58 }
 0x71d   : > { %1859 = vmatprep.mubr.msk.bf16.mxu1 %vm2280_vm0, %v2278_v0  ;;  %1856 = vmatpush3.bf16.msra.mxu1 %v2012_v35 }
 0x71e   : > { %1857 = vmatprep.subr.bf16.mxu1 %v2278_v0 }
 0x7e7   : > { %v1190_v18 = vpop.f32.mrb[16].mxu1 }
 0x7e8   : > { %v1196_v19 = vpack.c.bf16 %v1190_v18, %v1190_v18  ;;  %v1833_v20 = vpop.f32.mrb[17].mxu1 }
 0x7e9   : > { %v1193_v21 = vpop.f32.mrb[18].mxu1 }
 0x7ea   : > { %v1834_v22 = vpop.f32.mrb[19].mxu1  ;;  %1840 = vmatmul.mubr.msk.bf16.vlgmr.msra.gmra.mrb[20].mxu0 %vm736_vm1, %v1196_v19 }
 0x7eb   : > { %1851 = vmatprep.mubr.msk.bf16.mxu0 %vm2280_vm0, %v2278_v0  ;;  %v2013_v0 = vld [vmem:[#allocation9 + $0x38] sm:$0xff]  }
 0x7ec   : > { %1858 = vmatpush3.bf16.msra.mxu1 %v2013_v0 }
 0x7ef   : > { %v1301_v23 = vpop.f32.mrb[20].mxu1 }
 0x7f0   : > { %v1847_v24 = vpop.f32.mrb[21].mxu1  ;;  %v1307_v25 = vsel %vm783_vm3, %v1301_v23, -inf }
 0x7f1   : > { %1308 = vmax.xlane.f32.xlu0 %v1307_v25  ;;  %v1304_v26 = vpop.f32.mrb[22].mxu1 }
 0x7f2   : > { %v1848_v28 = vpop.f32.mrb[23].mxu1 }
 0x87e   : > { %v1309_v29 = vpop.xlane.xlu0 %1308 }
 0x87f   : > { %v1310_v30 = vsub.f32 %v1301_v23, %v1309_v29 }
 0x881   : > { %v1311_v31 = vmul.f32 1.442695, %v1310_v30 }
 0x883   : > { %2026 = vpow2.f32 %v1311_v31 }
 0x88d   : > { %v2027_v33 = vpop.eup %2026 }
 0x88e   : > { %v1313_v34 = vsel %vm783_vm3, %v2027_v33, 0.0 }
 0x88f   : > { %1314 = vadd.xlane.f32.xlu1 %v1313_v34 }
 0x8a0   : > { %1321 = vrot.lane.b32.xlu1 %v2632_v15, %s2283_s29 }
 0x8bd   : > { %v1250_v36 = vpop.f32.mrb[20].mxu0 }
 0x8be   : > { %v1256_v37 = vadd.f32 %v1250_v36, %v2675_v57  ;;  %v1841_v38 = vpop.f32.mrb[21].mxu0 }
 0x8bf   : > { %v1253_v39 = vpop.f32.mrb[22].mxu0 }
 0x8c0   : > { %v1842_v40 = vpop.f32.mrb[23].mxu0 }
 0x91c   : > { %v1315_v41 = vpop.xlane.xlu1 %1314 }
 0x91d   : > { %2028 = vrcp.f32 %v1315_v41 }
 0x920   : > { %v1322_v42 = vpop.permute.xlu1 %1321 }
 0x921   : > { %v1327_v43 = vsel %vm801_vm2, %v1322_v42, 0 }
 0x922   : > { %1850 = vmatpush3.bf16.msra.mxu0 %v1327_v43 }
 0x927   : > { %v2029_v44 = vpop.eup %2028 }
 0x928   : > { %v1317_v45 = vmul.f32 %v2029_v44, %v2027_v33 }
 0x92a   : > { %v1318_v15 = vpack.c.bf16 %v1317_v45, %v1317_v45 }
 0x92c   : > { %1708 = vst.msk [vmem:[%s2644_s7 + $0xc] sm:$0xf] %vm796_vm4, %v1318_v15  ;;  %1852 = vmatmul.mubr.msk.bf16.vlgmr.msra.gmra.mrb[24].mxu0 %vm783_vm3, %v1318_v15  ;;  %s2152_s7 = scalar_lea.vmem %s2151_s1, 512 }
 0x92d   : > { %p2154_p5 = scmp.lt.s32.totalorder %s2152_s7, %s2146_s30 }
 0x92f   : > { %p2155_p9 = por %p2154_p5, %p2153_p11 }
 0x931   : > { %p2156_p0 = pnand %p2155_p9, %p2149_p10 }
 0x9ff   : > { %v1363_v46 = vpop.f32.mrb[24].mxu0 }
 0xa00   : > { %v1369_v47 = vpack.c.bf16 %v1363_v46, %v1363_v46  ;;  %v1853_v48 = vpop.f32.mrb[25].mxu0 }
 0xa01   : > { %v1366_v49 = vpop.f32.mrb[26].mxu0 }
 0xa02   : > { %v1854_v50 = vpop.f32.mrb[27].mxu0  ;;  %1860 = vmatmul.mubr.msk.bf16.vlgmr.msra.gmra.mrb[24].mxu1 %vm736_vm1, %v1369_v47 }
 0xad5   : > { %v1423_v54 = vpop.f32.mrb[24].mxu1 }
 0xad6   : > { %v1429_v56 = vadd.f32 %v1423_v54, %v1256_v37  ;;  %v1861_v57 = vpop.f32.mrb[25].mxu1 }
 0xad7   : > { %v1426_v60 = vpop.f32.mrb[26].mxu1 }
 0xad8   : > { %v1436_v61 = vadd.f32 %v1435_v53, %v1429_v56  ;;  %v1862_v62 = vpop.f32.mrb[27].mxu1 }
 0xada   : > { %v1438_v63 = vadd.f32 %v1437_v55, %v1436_v61 }
 0xadc   : > { %1443 = vadd.xlane.f32.xlu1 %v1438_v63 }
 0xb69   : > { %v1444_v1 = vpop.xlane.xlu1 %1443 }
 0xb6a   : > { %v1446_v2 = vmul.f32 0.0078125, %v1444_v1 }
 0xb6c   : > { %v1447_v3 = vsub.f32 %v1438_v63, %v1446_v2 }
 0xb6e   : > { %v1448_v4 = vmul.f32 %v1447_v3, %v1447_v3 }
 0xb70   : > { %1449 = vadd.xlane.f32.xlu0 %v1448_v4 }
 0xb71   : > { %2159 = shalt.err (!%p2156_p0)
}
 0xb72   : > { %s2160_s29 = scalar_lea.hbm %s2719_s23, 256  ;;  %s2164_s27 = scalar_lea.hbm %s2857_s21, 512 }
 0xb73   : > { %p2161_p4 = scmp.ne.s32.totalorder %s2719_s23, %s2160_s29  ;;  %p2165_p1 = scmp.lt.u32.totalorder %s2719_s23, %s2857_s21 }
 0xb74   : > { %p2166_p12 = scmp.lt.u32.totalorder %s2164_s27, %s2160_s29  ;;  %p2168_p13 = scmp.lt.u32.totalorder %s2160_s29, %s2719_s23 }
 0xb75   : > { %p2162_p2 = pnand %p2161_p4, %p2502_p3 }
 0xb76   : > { %p2167_p7 = por %p2166_p12, %p2165_p1 }
 0xb77   : > { %p2163_p8 = pneg %p2162_p2 }
 0xb78   : > { %p2169_p6 = por %p2168_p13, %p2167_p7 }
 0xb7a   : > { %p2170_p10 = pnand %p2169_p6, %p2163_p8 }
 0xb7c   : > { %2173 = shalt.err (!%p2170_p10)
}
 0xb7d   : > { %s2285_s30 = smov 4   ;;  %s2858_s7 = sld [smem:[#allocation22_spill]] }
 0xb7e   : > { %1878 = dma.vmem_to_hbm [thread:$0]  (%p2502_p3), %s2721_s22, 256, %s2719_s23, %s1473_s25, %s2282_s8, %s2282_s8, %s2285_s30  }
 0xb7f   : > { %s2859_s11 = sld [smem:[#allocation23_spill]]  ;;  %s1715_s8 = sshll.u32 %s2260_s16, 6 }
 0xb80   : > { %s438_s22 = scalar_lea.vmem [#allocation11], %s1658_s28  ;;  %s2860_s10 = sld [smem:[#allocation24_spill]] }
 0xb81   : > { %s1487_s23 = sshll.u32 %s438_s22, 4  ;;  %s1468_s30 = scalar_lea.sflag [#allocation5], %s2555_s13  ;;  %s2765_s23 = int_to_ptr.vmem [resolvable:$true] %s1487_s23 }
 0xb82   : > { %s2174_s12 = scalar_lea.vmem %s2765_s23, 64  ;;  %s2286_s16 = smov [#allocation11]  }
 0xb83   : > { %v1439_v7 = vld [vmem:[%s2858_s7] sm:$0x1]  ;;  %p2175_p11 = scmp.ne.s32.totalorder %s2765_s23, %s2174_s12  ;;  %s2178_s28 = sshll.u32 %s2286_s16, 4  ;;  %s2179_s28 = int_to_ptr.vmem [resolvable:$false] %s2178_s28 }
 0xb84   : > { %v1440_v9 = vunpack.c.l.bf16 %v1439_v7  ;;  %s2180_s1 = scalar_lea.vmem %s2179_s28, 128  ;;  %p2181_p0 = scmp.lt.s32.totalorder %s2765_s23, %s2179_s28 }
 0xb85   : > { %v1441_v8 = vld [vmem:[%s2859_s11] sm:$0x1]  ;;  %p2176_p5 = pnand %p2175_p11, %p2502_p3  ;;  %p2182_p4 = scmp.lt.s32.totalorder %s2180_s1, %s2174_s12 }
 0xb86   : > { %v1442_v10 = vunpack.c.l.bf16 %v1441_v8  ;;  %v1458_v11 = vrot.slane %v1440_v9, %v2599_v32  ;;  %s2763_s20 = scalar_lea.hbm %s2860_s10, %s1715_s8 }
 0xb87   : > { %p2177_p9 = pneg %p2176_p5  ;;  %p2183_p2 = por %p2182_p4, %p2181_p0 }
 0xb88   : > { %v1463_v14 = vrot.slane %v1442_v10, %v2599_v32 }
 0xb89   : > { %p2184_p8 = pnand %p2183_p2, %p2177_p9 }
 0xbfd   : > { %v1450_v27 = vpop.xlane.xlu0 %1449 }
 0xbfe   : > { %v1451_v5 = vmul.f32 0.0078125, %v1450_v27 }
 0xc00   : > { %v1452_v6 = vadd.f32 1e-05, %v1451_v5 }
 0xc02   : > { %2030 = vrsqrt.f32 %v1452_v6 }
 0xc0c   : > { %v2031_v12 = vpop.eup %2030 }
 0xc0d   : > { %v1454_v13 = vmul.f32 %v2031_v12, %v1447_v3 }
 0xc0f   : > { %v1459_v16 = vmul.f32 %v1458_v11, %v1454_v13 }
 0xc11   : > { %v1464_v17 = vadd.f32 %v1463_v14, %v1459_v16 }
 0xc13   : > { %v1465_v58 = vpack.c.bf16 %v1464_v17, %v1464_v17 }
 0xc15   : > { %1466 = vst [vmem:[%s438_s22] sm:$0xf] %v1465_v58 }
 0xc16   : > { %2187 = shalt.err (!%p2184_p8)
}
 0xc17   : > { %s2188_s13 = scalar_lea.hbm %s2763_s20, 64  ;;  %s2192_s19 = scalar_lea.hbm %s2860_s10, 128 }
 0xc18   : > { %p2189_p1 = scmp.ne.s32.totalorder %s2763_s20, %s2188_s13  ;;  %p2193_p13 = scmp.lt.u32.totalorder %s2763_s20, %s2860_s10 }
 0xc19   : > { %p2194_p6 = scmp.lt.u32.totalorder %s2192_s19, %s2188_s13  ;;  %p2196_p11 = scmp.lt.u32.totalorder %s2188_s13, %s2763_s20 }
 0xc1a   : > { %p2190_p12 = pnand %p2189_p1, %p2502_p3 }
 0xc1b   : > { %p2195_p10 = por %p2194_p6, %p2193_p13 }
 0xc1c   : > { %p2191_p7 = pneg %p2190_p12 }
 0xc1d   : > { %p2197_p5 = por %p2196_p11, %p2195_p10 }
 0xc1f   : > { %p2198_p9 = pnand %p2197_p5, %p2191_p7 }
 0xc21   : > { %2201 = shalt.err (!%p2198_p9)
}
 0xc22   : > { %1877 = dma.vmem_to_hbm [thread:$0]  (%p2502_p3), %s2765_s23, 64, %s2763_s20, %s1468_s30  }
 0xc23 PF: > { %s2861_s22 = sld [smem:[#allocation19_spill]]  ;;  %s2862_s25 = sld [smem:[#allocation20_spill]] }
 0xc24   : > { %p2864_p4 = scmp.ge.s32.totalorder %s2268_s18, 2 }
 0xc29   : > { %s1516_s27 = sand.u32 1, %s2861_s22   ;;  %p2863_p0 = scmp.ne.s32.totalorder %s2862_s25, 0 }
 0xc2a   : > { %s1517_s12 = scalar_lea.sflag [#allocation5], %s1516_s27 }
 0xc2b   : > { %p1896_p2 = pnand %p2864_p4, %p2863_p0 }
 0xc2d   : > { %2239 = dma.done.wait (!%p1896_p2), %s1517_s12, 64  }
 0xc2e   : > { %2241 = vsyncadd (!%p1896_p2), %s1517_s12, 4294967232  ;;  %s1526_s16 = scalar_lea.sflag [#allocation13], %s1516_s27 }
 0xc2f   : > { %2243 = dma.done.wait (!%p1896_p2), %s1526_s16, 256  }
 0xc30   : > { %2245 = vsyncadd (!%p1896_p2), %s1526_s16, 4294967040  ;;  %s32_s18 = sadd.s32 1, %s2268_s18   ;;  %s2865_s13 = smov %s2252_s14 }
 0xc31   : > { %p29_p8 = scmp.ge.s32.totalorder %s32_s18, 4   ;;  %s2866_s14 = smov %s2256_s15 }
 0xc32   : > { %s2867_s15 = smov %s2511_s26  ;;  %s2868_s16 = smov %s2264_s17 }
 0xc33   : > { %s2869_s17 = smov %s2871_s24  ;;  %31 = sbr.rel (!%p29_p8) target bundleno = 16 (0x10), region = 140 }
 0xc3a   :  { %1531 = vsyncpa [#allocation4], 1 }
 0xc3b   :  { %1533 = vsyncpa [#allocation4 + $0x1], 1 }
 0xc3c   :  { %1534 = vsyncpa [#allocation7], 1 }
 0xc3d   :  { %1535 = vsyncpa [#allocation10], 1 }
 0xc3e   :  { %1536 = vsyncpa [#allocation5], 1 }
 0xc3f   :  { %1538 = vsyncpa [#allocation5 + $0x1], 1 }
 0xc40   :  { %1539 = vsyncpa [#allocation13], 1 }
 0xc41   :  { %1541 = vsyncpa [#allocation13 + $0x1], 1 }

</bundles_post_ra>
